<compile_context>
chip_gen: v6e
topology: v6e:2x2x1
jax: 0.10.0
libtpu: 0.0.40
codegen_flags: <defaults>
</compile_context>

<pallas_src>
import functools
import math

import jax
import jax.numpy as jnp
from jax.experimental import pallas as pl
from jax.experimental.pallas import tpu as pltpu


def _pad_geometry(ks):
    """(top, bottom, left, right) padding — matches F.pad in the torch module."""
    if ks % 2 != 0:
        return ks // 2, ks // 2, ks // 2, ks // 2
    return ks // 2 - 1, ks // 2, ks // 2 - 1, ks // 2


def parabolic_kernels(scales, ks):
    """SemiConv2dParabolic._compute_kernel (max-plus branch): full 2-D kernels."""
    z_i = jnp.linspace(float((-ks) // 2 + 1), float(ks // 2), ks, dtype=jnp.float32)
    z = z_i[:, None] ** 2 + z_i[None, :] ** 2
    z = -z  # aggregation.__name__ == 'maxvalues'
    h = z[None, :, :] / (4.0 * scales.reshape(-1, 1, 1))
    c_out, c_in = scales.shape
    return h.reshape(c_out, c_in, ks, ks)


def separable_kernels(scales, ks):
    """1-D factors: k[co,ci,dy,dx] == k1[co,ci,dy] + k1[co,ci,dx] (exact in max-plus)."""
    z_i = jnp.linspace(float((-ks) // 2 + 1), float(ks // 2), ks, dtype=jnp.float32)
    z1 = -(z_i ** 2)
    return z1[None, None, :] / (4.0 * scales[:, :, None])  # (C_out, C_in, ks)


def _semi_conv_kernel(x_ref, k1_ref, bias_ref, o_ref, xpad_ref, *,
                      c_in, co_blk, co_blocks, ks, H, W, pt, pb, pwl, pwr):
    """One (batch, C_out-block) grid step -> co_blk output channels.

    x_ref:    (1, C_in, H, W)     VMEM   unpadded input block
    k1_ref:   (C_out*C_in*ks,)    SMEM   flattened separable 1-D kernels
    bias_ref: (C_out,)            SMEM
    o_ref:    (1, co_blk, H, W)   VMEM
    xpad_ref: (C_in, Hp, Wp)      VMEM scratch: padded input, data at (pt, pwl)
    """
    Hp = pt + H + pb          # = H + ks - 1
    Wp = pwl + W + pwr        # = W + ks - 1

    # -inf fill of the halo strips only; the interior is overwritten below.
    if pt > 0:
        xpad_ref[:, 0:pt, :] = jnp.full((c_in, pt, Wp), -jnp.inf, jnp.float32)
    if pb > 0:
        xpad_ref[:, pt + H:Hp, :] = jnp.full((c_in, pb, Wp), -jnp.inf, jnp.float32)
    if pwl > 0:
        xpad_ref[:, pt:pt + H, 0:pwl] = jnp.full((c_in, H, pwl), -jnp.inf, jnp.float32)
    if pwr > 0:
        xpad_ref[:, pt:pt + H, pwl + W:Wp] = jnp.full((c_in, H, pwr), -jnp.inf, jnp.float32)
    xpad_ref[:, pt:pt + H, pwl:pwl + W] = x_ref[0]

    # First output channel of this block (static when co_blocks == 1 so all
    # SMEM indexing stays static on the common path).
    co0 = 0 if co_blocks == 1 else pl.program_id(1) * co_blk

    # NOTE: fully-unrolled python loops are fine at these channel counts / ks;
    # for large c_out*c_in*ks switch to lax.fori_loop(..., unroll=True) to
    # bound vreg live ranges and compile time.
    for jc in range(co_blk):
        co = co0 + jc
        acc = None
        for ci in range(c_in):
            base = (co * c_in + ci) * ks
            # Read each SMEM tap scalar once; reuse in both passes (hoisted).
            kv = [k1_ref[base + d] for d in range(ks)]
            # vertical (sublane-shift) max-plus pass -> (H, Wp)
            colm = xpad_ref[ci, 0:H, :] + kv[0]
            for dy in range(1, ks):
                colm = jnp.maximum(colm, xpad_ref[ci, dy:dy + H, :] + kv[dy])
            # horizontal (lane-shift) max-plus pass, kept in vregs -> (H, W)
            res = colm[:, 0:W] + kv[0]
            for dx in range(1, ks):
                res = jnp.maximum(res, colm[:, dx:dx + W] + kv[dx])
            # linear sum over input channels (torch.sum(dim=2))
            acc = res if acc is None else acc + res
        o_ref[0, jc, :, :] = acc + bias_ref[co]


@functools.partial(jax.jit, static_argnums=(3,))
def semi_conv2d_parabolic(x, scales, bias, ks):
    """Forward of SemiConv2dParabolic: x [B, C_in, H, W] -> [B, C_out, H, W]."""
    B, C_in, H, W = x.shape
    C_out = scales.shape[0]
    # NOTE: assumes scales > 0 (module initializes them positive); a zero or
    # negative learned scale would silently produce inf / flipped kernels.

    k1_flat = separable_kernels(scales, ks).reshape(-1)  # (C_out*C_in*ks,)

    pt, pb, pwl, pwr = _pad_geometry(ks)
    Hp = pt + H + pb
    Wp = pwl + W + pwr

    # v7x megacore load balance: with an odd batch one TensorCore would idle on
    # a pure grid=(B,) design, so split C_out into two parallel blocks then.
    # For even B the input block is DMA'd exactly once per batch element.
    co_blocks = 2 if (B % 2 == 1 and C_out % 2 == 0) else 1
    co_blk = C_out // co_blocks

    kernel_fn = functools.partial(
        _semi_conv_kernel, c_in=C_in, co_blk=co_blk, co_blocks=co_blocks,
        ks=ks, H=H, W=W, pt=pt, pb=pb, pwl=pwl, pwr=pwr)

    # NOTE: output stores are W(=16)-lane masked at demo shapes; lane-dense
    # stores only pay together with a lane-dense (co,ci)-packed compute layout
    # (otherwise the in-kernel relayout cancels the win).  At production
    # shapes feed W >= 128 (or a 128/256-wide W tile), add an H-tile grid axis
    # (multiples of 8, ks-1 row halo) and set vmem_limit_bytes for v7x's 64MiB.
    # TODO(synk): lane-dense (co,ci)->lane packing + MXU channel-sum for small-W shapes.
    return pl.pallas_call(
        kernel_fn,
        out_shape=jax.ShapeDtypeStruct((B, C_out, H, W), jnp.float32),
        grid=(B, co_blocks),
        in_specs=[
            pl.BlockSpec((1, C_in, H, W), lambda b, j: (b, 0, 0, 0)),
            pl.BlockSpec(memory_space=pltpu.SMEM),   # separable 1-D kernels
            pl.BlockSpec(memory_space=pltpu.SMEM),   # bias
        ],
        out_specs=pl.BlockSpec((1, co_blk, H, W), lambda b, j: (b, j, 0, 0)),
        scratch_shapes=[
            pltpu.VMEM((C_in, Hp, Wp), jnp.float32),   # padded input (-inf halo)
        ],
        compiler_params=pltpu.CompilerParams(
            dimension_semantics=("parallel", "parallel")),
    )(x, k1_flat, bias)


def ref_semi_conv(x, kernels, bias):
    """Pure-JAX reference mirroring SemiConv2d._semi_conv with max-plus semifield."""
    B, C_in, H, W = x.shape
    C_out, _, M, N = kernels.shape
    pt, pb, pwl, pwr = _pad_geometry(M)
    xp = jnp.pad(x, ((0, 0), (0, 0), (pt, pb), (pwl, pwr)), constant_values=-jnp.inf)
    out = jnp.full((B, C_out, C_in, H, W), -jnp.inf, jnp.float32)
    for dy in range(M):
        for dx in range(N):
            patch = xp[:, None, :, dy:dy + H, dx:dx + W]       # B,1,C_in,H,W
            kval = kernels[None, :, :, dy, dx, None, None]     # 1,C_out,C_in,1,1
            out = jnp.maximum(out, patch + kval)
    return out.sum(axis=2) + bias[None, :, None, None]


if __name__ == "__main__":
    B, C_in, C_out, H, W, ks = 2, 4, 4, 16, 16, 3
    initial_scale = 1.0

    key = jax.random.PRNGKey(0)
    k_scale, k_bias, k_x = jax.random.split(key, 3)

    # Module init is full(initial_scale); perturb slightly (scales are learnable)
    # so per-(c_out, c_in) kernel indexing is actually exercised by the check.
    scales = initial_scale + 0.25 * jax.random.uniform(
        k_scale, (C_out, C_in), jnp.float32)
    bound = 1.0 / math.sqrt(C_in)
    bias = jax.random.uniform(k_bias, (C_out,), jnp.float32,
                              minval=-bound, maxval=bound)
    x = jax.random.normal(k_x, (B, C_in, H, W), dtype=jnp.float32)

    out = semi_conv2d_parabolic(x, scales, bias, ks)
    out = jax.block_until_ready(out)

    ref = ref_semi_conv(x, parabolic_kernels(scales, ks), bias)
    assert out.shape == (B, C_out, H, W)
    assert jnp.allclose(out, ref, atol=1e-5, rtol=1e-5), \
        "Pallas output mismatch vs reference"
    print("KERNEL_OK")
</pallas_src>

<mosaic_0001>
module attributes {stable_mosaic.version = 11 : i64} {
  func.func @_semi_conv_kernel(%arg0: i32, %arg1: i32, %arg2: memref<1x4x16x16xf32, #tpu.memory_space<vmem>>, %arg3: memref<48xf32, #tpu.memory_space<smem>>, %arg4: memref<4xf32, #tpu.memory_space<smem>>, %arg5: memref<1x4x16x16xf32, #tpu.memory_space<vmem>>, %arg6: memref<4x18x18xf32, #tpu.memory_space<vmem>>) attributes {dimension_semantics = [#tpu.dimension_semantics<parallel>, #tpu.dimension_semantics<parallel>], iteration_bounds = array<i64: 2, 1>, scalar_prefetch = 0 : i64, scratch_operands = 1 : i64, tpu.core_type = #tpu.core_type<tc>, window_params = [{transform_indices = @transform_0, window_bounds = array<i64: 1, 4, 16, 16>}, {transform_indices = @transform_1, window_bounds = array<i64: 48>}, {transform_indices = @transform_2, window_bounds = array<i64: 4>}, {transform_indices = @transform_3, window_bounds = array<i64: 1, 4, 16, 16>}]} {
    %cst = arith.constant 0xFF800000 : f32
    %0 = vector.broadcast %cst : f32 to vector<4x1x18xf32>
    %c0 = arith.constant 0 : index
    %c0_0 = arith.constant 0 : index
    %c0_1 = arith.constant 0 : index
    %1 = vector.load %arg6[%c0, %c0_0, %c0_1] : memref<4x18x18xf32, #tpu.memory_space<vmem>>, vector<4x1x18xf32>
    tpu.vector_store %arg6[%c0, %c0_0, %c0_1], %0 {strides = array<i32>} : memref<4x18x18xf32, #tpu.memory_space<vmem>>, vector<4x1x18xf32>,
    %cst_2 = arith.constant 0xFF800000 : f32
    %2 = vector.broadcast %cst_2 : f32 to vector<4x1x18xf32>
    %c0_3 = arith.constant 0 : index
    %c17 = arith.constant 17 : index
    %c0_4 = arith.constant 0 : index
    %3 = vector.load %arg6[%c0_3, %c17, %c0_4] : memref<4x18x18xf32, #tpu.memory_space<vmem>>, vector<4x1x18xf32>
    tpu.vector_store %arg6[%c0_3, %c17, %c0_4], %2 {strides = array<i32>} : memref<4x18x18xf32, #tpu.memory_space<vmem>>, vector<4x1x18xf32>,
    %cst_5 = arith.constant 0xFF800000 : f32
    %4 = vector.broadcast %cst_5 : f32 to vector<4x16x1xf32>
    %c0_6 = arith.constant 0 : index
    %c1 = arith.constant 1 : index
    %c0_7 = arith.constant 0 : index
    %5 = vector.load %arg6[%c0_6, %c1, %c0_7] : memref<4x18x18xf32, #tpu.memory_space<vmem>>, vector<4x16x1xf32>
    tpu.vector_store %arg6[%c0_6, %c1, %c0_7], %4 {strides = array<i32>} : memref<4x18x18xf32, #tpu.memory_space<vmem>>, vector<4x16x1xf32>,
    %cst_8 = arith.constant 0xFF800000 : f32
    %6 = vector.broadcast %cst_8 : f32 to vector<4x16x1xf32>
    %c0_9 = arith.constant 0 : index
    %c1_10 = arith.constant 1 : index
    %c17_11 = arith.constant 17 : index
    %7 = vector.load %arg6[%c0_9, %c1_10, %c17_11] : memref<4x18x18xf32, #tpu.memory_space<vmem>>, vector<4x16x1xf32>
    tpu.vector_store %arg6[%c0_9, %c1_10, %c17_11], %6 {strides = array<i32>} : memref<4x18x18xf32, #tpu.memory_space<vmem>>, vector<4x16x1xf32>,
    %c0_12 = arith.constant 0 : index
    %c0_13 = arith.constant 0 : index
    %c0_14 = arith.constant 0 : index
    %c0_15 = arith.constant 0 : index
    %8 = vector.load %arg2[%c0_12, %c0_13, %c0_14, %c0_15] : memref<1x4x16x16xf32, #tpu.memory_space<vmem>>, vector<1x4x16x16xf32>
    %9 = vector.shape_cast %8 : vector<1x4x16x16xf32> to vector<4x16x16xf32>
    %c0_16 = arith.constant 0 : index
    %c1_17 = arith.constant 1 : index
    %c1_18 = arith.constant 1 : index
    %10 = vector.load %arg6[%c0_16, %c1_17, %c1_18] : memref<4x18x18xf32, #tpu.memory_space<vmem>>, vector<4x16x16xf32>
    tpu.vector_store %arg6[%c0_16, %c1_17, %c1_18], %9 {strides = array<i32>} : memref<4x18x18xf32, #tpu.memory_space<vmem>>, vector<4x16x16xf32>,
    %c0_19 = arith.constant 0 : index
    %11 = memref.load %arg3[%c0_19] : memref<48xf32, #tpu.memory_space<smem>>
    %c1_20 = arith.constant 1 : index
    %12 = memref.load %arg3[%c1_20] : memref<48xf32, #tpu.memory_space<smem>>
    %c2 = arith.constant 2 : index
    %13 = memref.load %arg3[%c2] : memref<48xf32, #tpu.memory_space<smem>>
    %c0_21 = arith.constant 0 : index
    %c0_22 = arith.constant 0 : index
    %c0_23 = arith.constant 0 : index
    %14 = vector.load %arg6[%c0_21, %c0_22, %c0_23] : memref<4x18x18xf32, #tpu.memory_space<vmem>>, vector<1x16x18xf32>
    %15 = vector.shape_cast %14 : vector<1x16x18xf32> to vector<16x18xf32>
    %16 = vector.broadcast %11 : f32 to vector<16x18xf32>
    %17 = arith.addf %15, %16 : vector<16x18xf32>
    %c0_24 = arith.constant 0 : index
    %c1_25 = arith.constant 1 : index
    %c0_26 = arith.constant 0 : index
    %18 = vector.load %arg6[%c0_24, %c1_25, %c0_26] : memref<4x18x18xf32, #tpu.memory_space<vmem>>, vector<1x16x18xf32>
    %19 = vector.shape_cast %18 : vector<1x16x18xf32> to vector<16x18xf32>
    %20 = vector.broadcast %12 : f32 to vector<16x18xf32>
    %21 = arith.addf %19, %20 : vector<16x18xf32>
    %22 = arith.maximumf %17, %21 : vector<16x18xf32>
    %c0_27 = arith.constant 0 : index
    %c2_28 = arith.constant 2 : index
    %c0_29 = arith.constant 0 : index
    %23 = vector.load %arg6[%c0_27, %c2_28, %c0_29] : memref<4x18x18xf32, #tpu.memory_space<vmem>>, vector<1x16x18xf32>
    %24 = vector.shape_cast %23 : vector<1x16x18xf32> to vector<16x18xf32>
    %25 = vector.broadcast %13 : f32 to vector<16x18xf32>
    %26 = arith.addf %24, %25 : vector<16x18xf32>
    %27 = arith.maximumf %22, %26 : vector<16x18xf32>
    %28 = vector.extract_strided_slice %27 {offsets = [0, 0], sizes = [16, 16], strides = [1, 1]} : vector<16x18xf32> to vector<16x16xf32>
    %29 = vector.broadcast %11 : f32 to vector<16x16xf32>
    %30 = arith.addf %28, %29 : vector<16x16xf32>
    %31 = vector.extract_strided_slice %27 {offsets = [0, 1], sizes = [16, 16], strides = [1, 1]} : vector<16x18xf32> to vector<16x16xf32>
    %32 = vector.broadcast %12 : f32 to vector<16x16xf32>
    %33 = arith.addf %31, %32 : vector<16x16xf32>
    %34 = arith.maximumf %30, %33 : vector<16x16xf32>
    %35 = vector.extract_strided_slice %27 {offsets = [0, 2], sizes = [16, 16], strides = [1, 1]} : vector<16x18xf32> to vector<16x16xf32>
    %36 = vector.broadcast %13 : f32 to vector<16x16xf32>
    %37 = arith.addf %35, %36 : vector<16x16xf32>
    %38 = arith.maximumf %34, %37 : vector<16x16xf32>
    %c3 = arith.constant 3 : index
    %39 = memref.load %arg3[%c3] : memref<48xf32, #tpu.memory_space<smem>>
    %c4 = arith.constant 4 : index
    %40 = memref.load %arg3[%c4] : memref<48xf32, #tpu.memory_space<smem>>
    %c5 = arith.constant 5 : index
    %41 = memref.load %arg3[%c5] : memref<48xf32, #tpu.memory_space<smem>>
    %c1_30 = arith.constant 1 : index
    %c0_31 = arith.constant 0 : index
    %c0_32 = arith.constant 0 : index
    %42 = vector.load %arg6[%c1_30, %c0_31, %c0_32] : memref<4x18x18xf32, #tpu.memory_space<vmem>>, vector<1x16x18xf32>
    %43 = vector.shape_cast %42 : vector<1x16x18xf32> to vector<16x18xf32>
    %44 = vector.broadcast %39 : f32 to vector<16x18xf32>
    %45 = arith.addf %43, %44 : vector<16x18xf32>
    %c1_33 = arith.constant 1 : index
    %c1_34 = arith.constant 1 : index
    %c0_35 = arith.constant 0 : index
    %46 = vector.load %arg6[%c1_33, %c1_34, %c0_35] : memref<4x18x18xf32, #tpu.memory_space<vmem>>, vector<1x16x18xf32>
    %47 = vector.shape_cast %46 : vector<1x16x18xf32> to vector<16x18xf32>
    %48 = vector.broadcast %40 : f32 to vector<16x18xf32>
    %49 = arith.addf %47, %48 : vector<16x18xf32>
    %50 = arith.maximumf %45, %49 : vector<16x18xf32>
    %c1_36 = arith.constant 1 : index
    %c2_37 = arith.constant 2 : index
    %c0_38 = arith.constant 0 : index
    %51 = vector.load %arg6[%c1_36, %c2_37, %c0_38] : memref<4x18x18xf32, #tpu.memory_space<vmem>>, vector<1x16x18xf32>
    %52 = vector.shape_cast %51 : vector<1x16x18xf32> to vector<16x18xf32>
    %53 = vector.broadcast %41 : f32 to vector<16x18xf32>
    %54 = arith.addf %52, %53 : vector<16x18xf32>
    %55 = arith.maximumf %50, %54 : vector<16x18xf32>
    %56 = vector.extract_strided_slice %55 {offsets = [0, 0], sizes = [16, 16], strides = [1, 1]} : vector<16x18xf32> to vector<16x16xf32>
    %57 = vector.broadcast %39 : f32 to vector<16x16xf32>
    %58 = arith.addf %56, %57 : vector<16x16xf32>
    %59 = vector.extract_strided_slice %55 {offsets = [0, 1], sizes = [16, 16], strides = [1, 1]} : vector<16x18xf32> to vector<16x16xf32>
    %60 = vector.broadcast %40 : f32 to vector<16x16xf32>
    %61 = arith.addf %59, %60 : vector<16x16xf32>
    %62 = arith.maximumf %58, %61 : vector<16x16xf32>
    %63 = vector.extract_strided_slice %55 {offsets = [0, 2], sizes = [16, 16], strides = [1, 1]} : vector<16x18xf32> to vector<16x16xf32>
    %64 = vector.broadcast %41 : f32 to vector<16x16xf32>
    %65 = arith.addf %63, %64 : vector<16x16xf32>
    %66 = arith.maximumf %62, %65 : vector<16x16xf32>
    %67 = arith.addf %38, %66 : vector<16x16xf32>
    %c6 = arith.constant 6 : index
    %68 = memref.load %arg3[%c6] : memref<48xf32, #tpu.memory_space<smem>>
    %c7 = arith.constant 7 : index
    %69 = memref.load %arg3[%c7] : memref<48xf32, #tpu.memory_space<smem>>
    %c8 = arith.constant 8 : index
    %70 = memref.load %arg3[%c8] : memref<48xf32, #tpu.memory_space<smem>>
    %c2_39 = arith.constant 2 : index
    %c0_40 = arith.constant 0 : index
    %c0_41 = arith.constant 0 : index
    %71 = vector.load %arg6[%c2_39, %c0_40, %c0_41] : memref<4x18x18xf32, #tpu.memory_space<vmem>>, vector<1x16x18xf32>
    %72 = vector.shape_cast %71 : vector<1x16x18xf32> to vector<16x18xf32>
    %73 = vector.broadcast %68 : f32 to vector<16x18xf32>
    %74 = arith.addf %72, %73 : vector<16x18xf32>
    %c2_42 = arith.constant 2 : index
    %c1_43 = arith.constant 1 : index
    %c0_44 = arith.constant 0 : index
    %75 = vector.load %arg6[%c2_42, %c1_43, %c0_44] : memref<4x18x18xf32, #tpu.memory_space<vmem>>, vector<1x16x18xf32>
    %76 = vector.shape_cast %75 : vector<1x16x18xf32> to vector<16x18xf32>
    %77 = vector.broadcast %69 : f32 to vector<16x18xf32>
    %78 = arith.addf %76, %77 : vector<16x18xf32>
    %79 = arith.maximumf %74, %78 : vector<16x18xf32>
    %c2_45 = arith.constant 2 : index
    %c2_46 = arith.constant 2 : index
    %c0_47 = arith.constant 0 : index
    %80 = vector.load %arg6[%c2_45, %c2_46, %c0_47] : memref<4x18x18xf32, #tpu.memory_space<vmem>>, vector<1x16x18xf32>
    %81 = vector.shape_cast %80 : vector<1x16x18xf32> to vector<16x18xf32>
    %82 = vector.broadcast %70 : f32 to vector<16x18xf32>
    %83 = arith.addf %81, %82 : vector<16x18xf32>
    %84 = arith.maximumf %79, %83 : vector<16x18xf32>
    %85 = vector.extract_strided_slice %84 {offsets = [0, 0], sizes = [16, 16], strides = [1, 1]} : vector<16x18xf32> to vector<16x16xf32>
    %86 = vector.broadcast %68 : f32 to vector<16x16xf32>
    %87 = arith.addf %85, %86 : vector<16x16xf32>
    %88 = vector.extract_strided_slice %84 {offsets = [0, 1], sizes = [16, 16], strides = [1, 1]} : vector<16x18xf32> to vector<16x16xf32>
    %89 = vector.broadcast %69 : f32 to vector<16x16xf32>
    %90 = arith.addf %88, %89 : vector<16x16xf32>
    %91 = arith.maximumf %87, %90 : vector<16x16xf32>
    %92 = vector.extract_strided_slice %84 {offsets = [0, 2], sizes = [16, 16], strides = [1, 1]} : vector<16x18xf32> to vector<16x16xf32>
    %93 = vector.broadcast %70 : f32 to vector<16x16xf32>
    %94 = arith.addf %92, %93 : vector<16x16xf32>
    %95 = arith.maximumf %91, %94 : vector<16x16xf32>
    %96 = arith.addf %67, %95 : vector<16x16xf32>
    %c9 = arith.constant 9 : index
    %97 = memref.load %arg3[%c9] : memref<48xf32, #tpu.memory_space<smem>>
    %c10 = arith.constant 10 : index
    %98 = memref.load %arg3[%c10] : memref<48xf32, #tpu.memory_space<smem>>
    %c11 = arith.constant 11 : index
    %99 = memref.load %arg3[%c11] : memref<48xf32, #tpu.memory_space<smem>>
    %c3_48 = arith.constant 3 : index
    %c0_49 = arith.constant 0 : index
    %c0_50 = arith.constant 0 : index
    %100 = vector.load %arg6[%c3_48, %c0_49, %c0_50] : memref<4x18x18xf32, #tpu.memory_space<vmem>>, vector<1x16x18xf32>
    %101 = vector.shape_cast %100 : vector<1x16x18xf32> to vector<16x18xf32>
    %102 = vector.broadcast %97 : f32 to vector<16x18xf32>
    %103 = arith.addf %101, %102 : vector<16x18xf32>
    %c3_51 = arith.constant 3 : index
    %c1_52 = arith.constant 1 : index
    %c0_53 = arith.constant 0 : index
    %104 = vector.load %arg6[%c3_51, %c1_52, %c0_53] : memref<4x18x18xf32, #tpu.memory_space<vmem>>, vector<1x16x18xf32>
    %105 = vector.shape_cast %104 : vector<1x16x18xf32> to vector<16x18xf32>
    %106 = vector.broadcast %98 : f32 to vector<16x18xf32>
    %107 = arith.addf %105, %106 : vector<16x18xf32>
    %108 = arith.maximumf %103, %107 : vector<16x18xf32>
    %c3_54 = arith.constant 3 : index
    %c2_55 = arith.constant 2 : index
    %c0_56 = arith.constant 0 : index
    %109 = vector.load %arg6[%c3_54, %c2_55, %c0_56] : memref<4x18x18xf32, #tpu.memory_space<vmem>>, vector<1x16x18xf32>
    %110 = vector.shape_cast %109 : vector<1x16x18xf32> to vector<16x18xf32>
    %111 = vector.broadcast %99 : f32 to vector<16x18xf32>
    %112 = arith.addf %110, %111 : vector<16x18xf32>
    %113 = arith.maximumf %108, %112 : vector<16x18xf32>
    %114 = vector.extract_strided_slice %113 {offsets = [0, 0], sizes = [16, 16], strides = [1, 1]} : vector<16x18xf32> to vector<16x16xf32>
    %115 = vector.broadcast %97 : f32 to vector<16x16xf32>
    %116 = arith.addf %114, %115 : vector<16x16xf32>
    %117 = vector.extract_strided_slice %113 {offsets = [0, 1], sizes = [16, 16], strides = [1, 1]} : vector<16x18xf32> to vector<16x16xf32>
    %118 = vector.broadcast %98 : f32 to vector<16x16xf32>
    %119 = arith.addf %117, %118 : vector<16x16xf32>
    %120 = arith.maximumf %116, %119 : vector<16x16xf32>
    %121 = vector.extract_strided_slice %113 {offsets = [0, 2], sizes = [16, 16], strides = [1, 1]} : vector<16x18xf32> to vector<16x16xf32>
    %122 = vector.broadcast %99 : f32 to vector<16x16xf32>
    %123 = arith.addf %121, %122 : vector<16x16xf32>
    %124 = arith.maximumf %120, %123 : vector<16x16xf32>
    %125 = arith.addf %96, %124 : vector<16x16xf32>
    %c0_57 = arith.constant 0 : index
    %126 = memref.load %arg4[%c0_57] : memref<4xf32, #tpu.memory_space<smem>>
    %127 = vector.broadcast %126 : f32 to vector<16x16xf32>
    %128 = arith.addf %125, %127 : vector<16x16xf32>
    %c0_58 = arith.constant 0 : index
    %c0_59 = arith.constant 0 : index
    %c0_60 = arith.constant 0 : index
    %c0_61 = arith.constant 0 : index
    %129 = vector.load %arg5[%c0_58, %c0_59, %c0_60, %c0_61] : memref<1x4x16x16xf32, #tpu.memory_space<vmem>>, vector<1x1x16x16xf32>
    %130 = vector.shape_cast %129 : vector<1x1x16x16xf32> to vector<16x16xf32>
    %131 = vector.shape_cast %128 : vector<16x16xf32> to vector<1x1x16x16xf32>
    tpu.vector_store %arg5[%c0_58, %c0_59, %c0_60, %c0_61], %131 {strides = array<i32>} : memref<1x4x16x16xf32, #tpu.memory_space<vmem>>, vector<1x1x16x16xf32>,
    %c12 = arith.constant 12 : index
    %132 = memref.load %arg3[%c12] : memref<48xf32, #tpu.memory_space<smem>>
    %c13 = arith.constant 13 : index
    %133 = memref.load %arg3[%c13] : memref<48xf32, #tpu.memory_space<smem>>
    %c14 = arith.constant 14 : index
    %134 = memref.load %arg3[%c14] : memref<48xf32, #tpu.memory_space<smem>>
    %c0_62 = arith.constant 0 : index
    %c0_63 = arith.constant 0 : index
    %c0_64 = arith.constant 0 : index
    %135 = vector.load %arg6[%c0_62, %c0_63, %c0_64] : memref<4x18x18xf32, #tpu.memory_space<vmem>>, vector<1x16x18xf32>
    %136 = vector.shape_cast %135 : vector<1x16x18xf32> to vector<16x18xf32>
    %137 = vector.broadcast %132 : f32 to vector<16x18xf32>
    %138 = arith.addf %136, %137 : vector<16x18xf32>
    %c0_65 = arith.constant 0 : index
    %c1_66 = arith.constant 1 : index
    %c0_67 = arith.constant 0 : index
    %139 = vector.load %arg6[%c0_65, %c1_66, %c0_67] : memref<4x18x18xf32, #tpu.memory_space<vmem>>, vector<1x16x18xf32>
    %140 = vector.shape_cast %139 : vector<1x16x18xf32> to vector<16x18xf32>
    %141 = vector.broadcast %133 : f32 to vector<16x18xf32>
    %142 = arith.addf %140, %141 : vector<16x18xf32>
    %143 = arith.maximumf %138, %142 : vector<16x18xf32>
    %c0_68 = arith.constant 0 : index
    %c2_69 = arith.constant 2 : index
    %c0_70 = arith.constant 0 : index
    %144 = vector.load %arg6[%c0_68, %c2_69, %c0_70] : memref<4x18x18xf32, #tpu.memory_space<vmem>>, vector<1x16x18xf32>
    %145 = vector.shape_cast %144 : vector<1x16x18xf32> to vector<16x18xf32>
    %146 = vector.broadcast %134 : f32 to vector<16x18xf32>
    %147 = arith.addf %145, %146 : vector<16x18xf32>
    %148 = arith.maximumf %143, %147 : vector<16x18xf32>
    %149 = vector.extract_strided_slice %148 {offsets = [0, 0], sizes = [16, 16], strides = [1, 1]} : vector<16x18xf32> to vector<16x16xf32>
    %150 = vector.broadcast %132 : f32 to vector<16x16xf32>
    %151 = arith.addf %149, %150 : vector<16x16xf32>
    %152 = vector.extract_strided_slice %148 {offsets = [0, 1], sizes = [16, 16], strides = [1, 1]} : vector<16x18xf32> to vector<16x16xf32>
    %153 = vector.broadcast %133 : f32 to vector<16x16xf32>
    %154 = arith.addf %152, %153 : vector<16x16xf32>
    %155 = arith.maximumf %151, %154 : vector<16x16xf32>
    %156 = vector.extract_strided_slice %148 {offsets = [0, 2], sizes = [16, 16], strides = [1, 1]} : vector<16x18xf32> to vector<16x16xf32>
    %157 = vector.broadcast %134 : f32 to vector<16x16xf32>
    %158 = arith.addf %156, %157 : vector<16x16xf32>
    %159 = arith.maximumf %155, %158 : vector<16x16xf32>
    %c15 = arith.constant 15 : index
    %160 = memref.load %arg3[%c15] : memref<48xf32, #tpu.memory_space<smem>>
    %c16 = arith.constant 16 : index
    %161 = memref.load %arg3[%c16] : memref<48xf32, #tpu.memory_space<smem>>
    %c17_71 = arith.constant 17 : index
    %162 = memref.load %arg3[%c17_71] : memref<48xf32, #tpu.memory_space<smem>>
    %c1_72 = arith.constant 1 : index
    %c0_73 = arith.constant 0 : index
    %c0_74 = arith.constant 0 : index
    %163 = vector.load %arg6[%c1_72, %c0_73, %c0_74] : memref<4x18x18xf32, #tpu.memory_space<vmem>>, vector<1x16x18xf32>
    %164 = vector.shape_cast %163 : vector<1x16x18xf32> to vector<16x18xf32>
    %165 = vector.broadcast %160 : f32 to vector<16x18xf32>
    %166 = arith.addf %164, %165 : vector<16x18xf32>
    %c1_75 = arith.constant 1 : index
    %c1_76 = arith.constant 1 : index
    %c0_77 = arith.constant 0 : index
    %167 = vector.load %arg6[%c1_75, %c1_76, %c0_77] : memref<4x18x18xf32, #tpu.memory_space<vmem>>, vector<1x16x18xf32>
    %168 = vector.shape_cast %167 : vector<1x16x18xf32> to vector<16x18xf32>
    %169 = vector.broadcast %161 : f32 to vector<16x18xf32>
    %170 = arith.addf %168, %169 : vector<16x18xf32>
    %171 = arith.maximumf %166, %170 : vector<16x18xf32>
    %c1_78 = arith.constant 1 : index
    %c2_79 = arith.constant 2 : index
    %c0_80 = arith.constant 0 : index
    %172 = vector.load %arg6[%c1_78, %c2_79, %c0_80] : memref<4x18x18xf32, #tpu.memory_space<vmem>>, vector<1x16x18xf32>
    %173 = vector.shape_cast %172 : vector<1x16x18xf32> to vector<16x18xf32>
    %174 = vector.broadcast %162 : f32 to vector<16x18xf32>
    %175 = arith.addf %173, %174 : vector<16x18xf32>
    %176 = arith.maximumf %171, %175 : vector<16x18xf32>
    %177 = vector.extract_strided_slice %176 {offsets = [0, 0], sizes = [16, 16], strides = [1, 1]} : vector<16x18xf32> to vector<16x16xf32>
    %178 = vector.broadcast %160 : f32 to vector<16x16xf32>
    %179 = arith.addf %177, %178 : vector<16x16xf32>
    %180 = vector.extract_strided_slice %176 {offsets = [0, 1], sizes = [16, 16], strides = [1, 1]} : vector<16x18xf32> to vector<16x16xf32>
    %181 = vector.broadcast %161 : f32 to vector<16x16xf32>
    %182 = arith.addf %180, %181 : vector<16x16xf32>
    %183 = arith.maximumf %179, %182 : vector<16x16xf32>
    %184 = vector.extract_strided_slice %176 {offsets = [0, 2], sizes = [16, 16], strides = [1, 1]} : vector<16x18xf32> to vector<16x16xf32>
    %185 = vector.broadcast %162 : f32 to vector<16x16xf32>
    %186 = arith.addf %184, %185 : vector<16x16xf32>
    %187 = arith.maximumf %183, %186 : vector<16x16xf32>
    %188 = arith.addf %159, %187 : vector<16x16xf32>
    %c18 = arith.constant 18 : index
    %189 = memref.load %arg3[%c18] : memref<48xf32, #tpu.memory_space<smem>>
    %c19 = arith.constant 19 : index
    %190 = memref.load %arg3[%c19] : memref<48xf32, #tpu.memory_space<smem>>
    %c20 = arith.constant 20 : index
    %191 = memref.load %arg3[%c20] : memref<48xf32, #tpu.memory_space<smem>>
    %c2_81 = arith.constant 2 : index
    %c0_82 = arith.constant 0 : index
    %c0_83 = arith.constant 0 : index
    %192 = vector.load %arg6[%c2_81, %c0_82, %c0_83] : memref<4x18x18xf32, #tpu.memory_space<vmem>>, vector<1x16x18xf32>
    %193 = vector.shape_cast %192 : vector<1x16x18xf32> to vector<16x18xf32>
    %194 = vector.broadcast %189 : f32 to vector<16x18xf32>
    %195 = arith.addf %193, %194 : vector<16x18xf32>
    %c2_84 = arith.constant 2 : index
    %c1_85 = arith.constant 1 : index
    %c0_86 = arith.constant 0 : index
    %196 = vector.load %arg6[%c2_84, %c1_85, %c0_86] : memref<4x18x18xf32, #tpu.memory_space<vmem>>, vector<1x16x18xf32>
    %197 = vector.shape_cast %196 : vector<1x16x18xf32> to vector<16x18xf32>
    %198 = vector.broadcast %190 : f32 to vector<16x18xf32>
    %199 = arith.addf %197, %198 : vector<16x18xf32>
    %200 = arith.maximumf %195, %199 : vector<16x18xf32>
    %c2_87 = arith.constant 2 : index
    %c2_88 = arith.constant 2 : index
    %c0_89 = arith.constant 0 : index
    %201 = vector.load %arg6[%c2_87, %c2_88, %c0_89] : memref<4x18x18xf32, #tpu.memory_space<vmem>>, vector<1x16x18xf32>
    %202 = vector.shape_cast %201 : vector<1x16x18xf32> to vector<16x18xf32>
    %203 = vector.broadcast %191 : f32 to vector<16x18xf32>
    %204 = arith.addf %202, %203 : vector<16x18xf32>
    %205 = arith.maximumf %200, %204 : vector<16x18xf32>
    %206 = vector.extract_strided_slice %205 {offsets = [0, 0], sizes = [16, 16], strides = [1, 1]} : vector<16x18xf32> to vector<16x16xf32>
    %207 = vector.broadcast %189 : f32 to vector<16x16xf32>
    %208 = arith.addf %206, %207 : vector<16x16xf32>
    %209 = vector.extract_strided_slice %205 {offsets = [0, 1], sizes = [16, 16], strides = [1, 1]} : vector<16x18xf32> to vector<16x16xf32>
    %210 = vector.broadcast %190 : f32 to vector<16x16xf32>
    %211 = arith.addf %209, %210 : vector<16x16xf32>
    %212 = arith.maximumf %208, %211 : vector<16x16xf32>
    %213 = vector.extract_strided_slice %205 {offsets = [0, 2], sizes = [16, 16], strides = [1, 1]} : vector<16x18xf32> to vector<16x16xf32>
    %214 = vector.broadcast %191 : f32 to vector<16x16xf32>
    %215 = arith.addf %213, %214 : vector<16x16xf32>
    %216 = arith.maximumf %212, %215 : vector<16x16xf32>
    %217 = arith.addf %188, %216 : vector<16x16xf32>
    %c21 = arith.constant 21 : index
    %218 = memref.load %arg3[%c21] : memref<48xf32, #tpu.memory_space<smem>>
    %c22 = arith.constant 22 : index
    %219 = memref.load %arg3[%c22] : memref<48xf32, #tpu.memory_space<smem>>
    %c23 = arith.constant 23 : index
    %220 = memref.load %arg3[%c23] : memref<48xf32, #tpu.memory_space<smem>>
    %c3_90 = arith.constant 3 : index
    %c0_91 = arith.constant 0 : index
    %c0_92 = arith.constant 0 : index
    %221 = vector.load %arg6[%c3_90, %c0_91, %c0_92] : memref<4x18x18xf32, #tpu.memory_space<vmem>>, vector<1x16x18xf32>
    %222 = vector.shape_cast %221 : vector<1x16x18xf32> to vector<16x18xf32>
    %223 = vector.broadcast %218 : f32 to vector<16x18xf32>
    %224 = arith.addf %222, %223 : vector<16x18xf32>
    %c3_93 = arith.constant 3 : index
    %c1_94 = arith.constant 1 : index
    %c0_95 = arith.constant 0 : index
    %225 = vector.load %arg6[%c3_93, %c1_94, %c0_95] : memref<4x18x18xf32, #tpu.memory_space<vmem>>, vector<1x16x18xf32>
    %226 = vector.shape_cast %225 : vector<1x16x18xf32> to vector<16x18xf32>
    %227 = vector.broadcast %219 : f32 to vector<16x18xf32>
    %228 = arith.addf %226, %227 : vector<16x18xf32>
    %229 = arith.maximumf %224, %228 : vector<16x18xf32>
    %c3_96 = arith.constant 3 : index
    %c2_97 = arith.constant 2 : index
    %c0_98 = arith.constant 0 : index
    %230 = vector.load %arg6[%c3_96, %c2_97, %c0_98] : memref<4x18x18xf32, #tpu.memory_space<vmem>>, vector<1x16x18xf32>
    %231 = vector.shape_cast %230 : vector<1x16x18xf32> to vector<16x18xf32>
    %232 = vector.broadcast %220 : f32 to vector<16x18xf32>
    %233 = arith.addf %231, %232 : vector<16x18xf32>
    %234 = arith.maximumf %229, %233 : vector<16x18xf32>
    %235 = vector.extract_strided_slice %234 {offsets = [0, 0], sizes = [16, 16], strides = [1, 1]} : vector<16x18xf32> to vector<16x16xf32>
    %236 = vector.broadcast %218 : f32 to vector<16x16xf32>
    %237 = arith.addf %235, %236 : vector<16x16xf32>
    %238 = vector.extract_strided_slice %234 {offsets = [0, 1], sizes = [16, 16], strides = [1, 1]} : vector<16x18xf32> to vector<16x16xf32>
    %239 = vector.broadcast %219 : f32 to vector<16x16xf32>
    %240 = arith.addf %238, %239 : vector<16x16xf32>
    %241 = arith.maximumf %237, %240 : vector<16x16xf32>
    %242 = vector.extract_strided_slice %234 {offsets = [0, 2], sizes = [16, 16], strides = [1, 1]} : vector<16x18xf32> to vector<16x16xf32>
    %243 = vector.broadcast %220 : f32 to vector<16x16xf32>
    %244 = arith.addf %242, %243 : vector<16x16xf32>
    %245 = arith.maximumf %241, %244 : vector<16x16xf32>
    %246 = arith.addf %217, %245 : vector<16x16xf32>
    %c1_99 = arith.constant 1 : index
    %247 = memref.load %arg4[%c1_99] : memref<4xf32, #tpu.memory_space<smem>>
    %248 = vector.broadcast %247 : f32 to vector<16x16xf32>
    %249 = arith.addf %246, %248 : vector<16x16xf32>
    %c0_100 = arith.constant 0 : index
    %c1_101 = arith.constant 1 : index
    %c0_102 = arith.constant 0 : index
    %c0_103 = arith.constant 0 : index
    %250 = vector.load %arg5[%c0_100, %c1_101, %c0_102, %c0_103] : memref<1x4x16x16xf32, #tpu.memory_space<vmem>>, vector<1x1x16x16xf32>
    %251 = vector.shape_cast %250 : vector<1x1x16x16xf32> to vector<16x16xf32>
    %252 = vector.shape_cast %249 : vector<16x16xf32> to vector<1x1x16x16xf32>
    tpu.vector_store %arg5[%c0_100, %c1_101, %c0_102, %c0_103], %252 {strides = array<i32>} : memref<1x4x16x16xf32, #tpu.memory_space<vmem>>, vector<1x1x16x16xf32>,
    %c24 = arith.constant 24 : index
    %253 = memref.load %arg3[%c24] : memref<48xf32, #tpu.memory_space<smem>>
    %c25 = arith.constant 25 : index
    %254 = memref.load %arg3[%c25] : memref<48xf32, #tpu.memory_space<smem>>
    %c26 = arith.constant 26 : index
    %255 = memref.load %arg3[%c26] : memref<48xf32, #tpu.memory_space<smem>>
    %c0_104 = arith.constant 0 : index
    %c0_105 = arith.constant 0 : index
    %c0_106 = arith.constant 0 : index
    %256 = vector.load %arg6[%c0_104, %c0_105, %c0_106] : memref<4x18x18xf32, #tpu.memory_space<vmem>>, vector<1x16x18xf32>
    %257 = vector.shape_cast %256 : vector<1x16x18xf32> to vector<16x18xf32>
    %258 = vector.broadcast %253 : f32 to vector<16x18xf32>
    %259 = arith.addf %257, %258 : vector<16x18xf32>
    %c0_107 = arith.constant 0 : index
    %c1_108 = arith.constant 1 : index
    %c0_109 = arith.constant 0 : index
    %260 = vector.load %arg6[%c0_107, %c1_108, %c0_109] : memref<4x18x18xf32, #tpu.memory_space<vmem>>, vector<1x16x18xf32>
    %261 = vector.shape_cast %260 : vector<1x16x18xf32> to vector<16x18xf32>
    %262 = vector.broadcast %254 : f32 to vector<16x18xf32>
    %263 = arith.addf %261, %262 : vector<16x18xf32>
    %264 = arith.maximumf %259, %263 : vector<16x18xf32>
    %c0_110 = arith.constant 0 : index
    %c2_111 = arith.constant 2 : index
    %c0_112 = arith.constant 0 : index
    %265 = vector.load %arg6[%c0_110, %c2_111, %c0_112] : memref<4x18x18xf32, #tpu.memory_space<vmem>>, vector<1x16x18xf32>
    %266 = vector.shape_cast %265 : vector<1x16x18xf32> to vector<16x18xf32>
    %267 = vector.broadcast %255 : f32 to vector<16x18xf32>
    %268 = arith.addf %266, %267 : vector<16x18xf32>
    %269 = arith.maximumf %264, %268 : vector<16x18xf32>
    %270 = vector.extract_strided_slice %269 {offsets = [0, 0], sizes = [16, 16], strides = [1, 1]} : vector<16x18xf32> to vector<16x16xf32>
    %271 = vector.broadcast %253 : f32 to vector<16x16xf32>
    %272 = arith.addf %270, %271 : vector<16x16xf32>
    %273 = vector.extract_strided_slice %269 {offsets = [0, 1], sizes = [16, 16], strides = [1, 1]} : vector<16x18xf32> to vector<16x16xf32>
    %274 = vector.broadcast %254 : f32 to vector<16x16xf32>
    %275 = arith.addf %273, %274 : vector<16x16xf32>
    %276 = arith.maximumf %272, %275 : vector<16x16xf32>
    %277 = vector.extract_strided_slice %269 {offsets = [0, 2], sizes = [16, 16], strides = [1, 1]} : vector<16x18xf32> to vector<16x16xf32>
    %278 = vector.broadcast %255 : f32 to vector<16x16xf32>
    %279 = arith.addf %277, %278 : vector<16x16xf32>
    %280 = arith.maximumf %276, %279 : vector<16x16xf32>
    %c27 = arith.constant 27 : index
    %281 = memref.load %arg3[%c27] : memref<48xf32, #tpu.memory_space<smem>>
    %c28 = arith.constant 28 : index
    %282 = memref.load %arg3[%c28] : memref<48xf32, #tpu.memory_space<smem>>
    %c29 = arith.constant 29 : index
    %283 = memref.load %arg3[%c29] : memref<48xf32, #tpu.memory_space<smem>>
    %c1_113 = arith.constant 1 : index
    %c0_114 = arith.constant 0 : index
    %c0_115 = arith.constant 0 : index
    %284 = vector.load %arg6[%c1_113, %c0_114, %c0_115] : memref<4x18x18xf32, #tpu.memory_space<vmem>>, vector<1x16x18xf32>
    %285 = vector.shape_cast %284 : vector<1x16x18xf32> to vector<16x18xf32>
    %286 = vector.broadcast %281 : f32 to vector<16x18xf32>
    %287 = arith.addf %285, %286 : vector<16x18xf32>
    %c1_116 = arith.constant 1 : index
    %c1_117 = arith.constant 1 : index
    %c0_118 = arith.constant 0 : index
    %288 = vector.load %arg6[%c1_116, %c1_117, %c0_118] : memref<4x18x18xf32, #tpu.memory_space<vmem>>, vector<1x16x18xf32>
    %289 = vector.shape_cast %288 : vector<1x16x18xf32> to vector<16x18xf32>
    %290 = vector.broadcast %282 : f32 to vector<16x18xf32>
    %291 = arith.addf %289, %290 : vector<16x18xf32>
    %292 = arith.maximumf %287, %291 : vector<16x18xf32>
    %c1_119 = arith.constant 1 : index
    %c2_120 = arith.constant 2 : index
    %c0_121 = arith.constant 0 : index
    %293 = vector.load %arg6[%c1_119, %c2_120, %c0_121] : memref<4x18x18xf32, #tpu.memory_space<vmem>>, vector<1x16x18xf32>
    %294 = vector.shape_cast %293 : vector<1x16x18xf32> to vector<16x18xf32>
    %295 = vector.broadcast %283 : f32 to vector<16x18xf32>
    %296 = arith.addf %294, %295 : vector<16x18xf32>
    %297 = arith.maximumf %292, %296 : vector<16x18xf32>
    %298 = vector.extract_strided_slice %297 {offsets = [0, 0], sizes = [16, 16], strides = [1, 1]} : vector<16x18xf32> to vector<16x16xf32>
    %299 = vector.broadcast %281 : f32 to vector<16x16xf32>
    %300 = arith.addf %298, %299 : vector<16x16xf32>
    %301 = vector.extract_strided_slice %297 {offsets = [0, 1], sizes = [16, 16], strides = [1, 1]} : vector<16x18xf32> to vector<16x16xf32>
    %302 = vector.broadcast %282 : f32 to vector<16x16xf32>
    %303 = arith.addf %301, %302 : vector<16x16xf32>
    %304 = arith.maximumf %300, %303 : vector<16x16xf32>
    %305 = vector.extract_strided_slice %297 {offsets = [0, 2], sizes = [16, 16], strides = [1, 1]} : vector<16x18xf32> to vector<16x16xf32>
    %306 = vector.broadcast %283 : f32 to vector<16x16xf32>
    %307 = arith.addf %305, %306 : vector<16x16xf32>
    %308 = arith.maximumf %304, %307 : vector<16x16xf32>
    %309 = arith.addf %280, %308 : vector<16x16xf32>
    %c30 = arith.constant 30 : index
    %310 = memref.load %arg3[%c30] : memref<48xf32, #tpu.memory_space<smem>>
    %c31 = arith.constant 31 : index
    %311 = memref.load %arg3[%c31] : memref<48xf32, #tpu.memory_space<smem>>
    %c32 = arith.constant 32 : index
    %312 = memref.load %arg3[%c32] : memref<48xf32, #tpu.memory_space<smem>>
    %c2_122 = arith.constant 2 : index
    %c0_123 = arith.constant 0 : index
    %c0_124 = arith.constant 0 : index
    %313 = vector.load %arg6[%c2_122, %c0_123, %c0_124] : memref<4x18x18xf32, #tpu.memory_space<vmem>>, vector<1x16x18xf32>
    %314 = vector.shape_cast %313 : vector<1x16x18xf32> to vector<16x18xf32>
    %315 = vector.broadcast %310 : f32 to vector<16x18xf32>
    %316 = arith.addf %314, %315 : vector<16x18xf32>
    %c2_125 = arith.constant 2 : index
    %c1_126 = arith.constant 1 : index
    %c0_127 = arith.constant 0 : index
    %317 = vector.load %arg6[%c2_125, %c1_126, %c0_127] : memref<4x18x18xf32, #tpu.memory_space<vmem>>, vector<1x16x18xf32>
    %318 = vector.shape_cast %317 : vector<1x16x18xf32> to vector<16x18xf32>
    %319 = vector.broadcast %311 : f32 to vector<16x18xf32>
    %320 = arith.addf %318, %319 : vector<16x18xf32>
    %321 = arith.maximumf %316, %320 : vector<16x18xf32>
    %c2_128 = arith.constant 2 : index
    %c2_129 = arith.constant 2 : index
    %c0_130 = arith.constant 0 : index
    %322 = vector.load %arg6[%c2_128, %c2_129, %c0_130] : memref<4x18x18xf32, #tpu.memory_space<vmem>>, vector<1x16x18xf32>
    %323 = vector.shape_cast %322 : vector<1x16x18xf32> to vector<16x18xf32>
    %324 = vector.broadcast %312 : f32 to vector<16x18xf32>
    %325 = arith.addf %323, %324 : vector<16x18xf32>
    %326 = arith.maximumf %321, %325 : vector<16x18xf32>
    %327 = vector.extract_strided_slice %326 {offsets = [0, 0], sizes = [16, 16], strides = [1, 1]} : vector<16x18xf32> to vector<16x16xf32>
    %328 = vector.broadcast %310 : f32 to vector<16x16xf32>
    %329 = arith.addf %327, %328 : vector<16x16xf32>
    %330 = vector.extract_strided_slice %326 {offsets = [0, 1], sizes = [16, 16], strides = [1, 1]} : vector<16x18xf32> to vector<16x16xf32>
    %331 = vector.broadcast %311 : f32 to vector<16x16xf32>
    %332 = arith.addf %330, %331 : vector<16x16xf32>
    %333 = arith.maximumf %329, %332 : vector<16x16xf32>
    %334 = vector.extract_strided_slice %326 {offsets = [0, 2], sizes = [16, 16], strides = [1, 1]} : vector<16x18xf32> to vector<16x16xf32>
    %335 = vector.broadcast %312 : f32 to vector<16x16xf32>
    %336 = arith.addf %334, %335 : vector<16x16xf32>
    %337 = arith.maximumf %333, %336 : vector<16x16xf32>
    %338 = arith.addf %309, %337 : vector<16x16xf32>
    %c33 = arith.constant 33 : index
    %339 = memref.load %arg3[%c33] : memref<48xf32, #tpu.memory_space<smem>>
    %c34 = arith.constant 34 : index
    %340 = memref.load %arg3[%c34] : memref<48xf32, #tpu.memory_space<smem>>
    %c35 = arith.constant 35 : index
    %341 = memref.load %arg3[%c35] : memref<48xf32, #tpu.memory_space<smem>>
    %c3_131 = arith.constant 3 : index
    %c0_132 = arith.constant 0 : index
    %c0_133 = arith.constant 0 : index
    %342 = vector.load %arg6[%c3_131, %c0_132, %c0_133] : memref<4x18x18xf32, #tpu.memory_space<vmem>>, vector<1x16x18xf32>
    %343 = vector.shape_cast %342 : vector<1x16x18xf32> to vector<16x18xf32>
    %344 = vector.broadcast %339 : f32 to vector<16x18xf32>
    %345 = arith.addf %343, %344 : vector<16x18xf32>
    %c3_134 = arith.constant 3 : index
    %c1_135 = arith.constant 1 : index
    %c0_136 = arith.constant 0 : index
    %346 = vector.load %arg6[%c3_134, %c1_135, %c0_136] : memref<4x18x18xf32, #tpu.memory_space<vmem>>, vector<1x16x18xf32>
    %347 = vector.shape_cast %346 : vector<1x16x18xf32> to vector<16x18xf32>
    %348 = vector.broadcast %340 : f32 to vector<16x18xf32>
    %349 = arith.addf %347, %348 : vector<16x18xf32>
    %350 = arith.maximumf %345, %349 : vector<16x18xf32>
    %c3_137 = arith.constant 3 : index
    %c2_138 = arith.constant 2 : index
    %c0_139 = arith.constant 0 : index
    %351 = vector.load %arg6[%c3_137, %c2_138, %c0_139] : memref<4x18x18xf32, #tpu.memory_space<vmem>>, vector<1x16x18xf32>
    %352 = vector.shape_cast %351 : vector<1x16x18xf32> to vector<16x18xf32>
    %353 = vector.broadcast %341 : f32 to vector<16x18xf32>
    %354 = arith.addf %352, %353 : vector<16x18xf32>
    %355 = arith.maximumf %350, %354 : vector<16x18xf32>
    %356 = vector.extract_strided_slice %355 {offsets = [0, 0], sizes = [16, 16], strides = [1, 1]} : vector<16x18xf32> to vector<16x16xf32>
    %357 = vector.broadcast %339 : f32 to vector<16x16xf32>
    %358 = arith.addf %356, %357 : vector<16x16xf32>
    %359 = vector.extract_strided_slice %355 {offsets = [0, 1], sizes = [16, 16], strides = [1, 1]} : vector<16x18xf32> to vector<16x16xf32>
    %360 = vector.broadcast %340 : f32 to vector<16x16xf32>
    %361 = arith.addf %359, %360 : vector<16x16xf32>
    %362 = arith.maximumf %358, %361 : vector<16x16xf32>
    %363 = vector.extract_strided_slice %355 {offsets = [0, 2], sizes = [16, 16], strides = [1, 1]} : vector<16x18xf32> to vector<16x16xf32>
    %364 = vector.broadcast %341 : f32 to vector<16x16xf32>
    %365 = arith.addf %363, %364 : vector<16x16xf32>
    %366 = arith.maximumf %362, %365 : vector<16x16xf32>
    %367 = arith.addf %338, %366 : vector<16x16xf32>
    %c2_140 = arith.constant 2 : index
    %368 = memref.load %arg4[%c2_140] : memref<4xf32, #tpu.memory_space<smem>>
    %369 = vector.broadcast %368 : f32 to vector<16x16xf32>
    %370 = arith.addf %367, %369 : vector<16x16xf32>
    %c0_141 = arith.constant 0 : index
    %c2_142 = arith.constant 2 : index
    %c0_143 = arith.constant 0 : index
    %c0_144 = arith.constant 0 : index
    %371 = vector.load %arg5[%c0_141, %c2_142, %c0_143, %c0_144] : memref<1x4x16x16xf32, #tpu.memory_space<vmem>>, vector<1x1x16x16xf32>
    %372 = vector.shape_cast %371 : vector<1x1x16x16xf32> to vector<16x16xf32>
    %373 = vector.shape_cast %370 : vector<16x16xf32> to vector<1x1x16x16xf32>
    tpu.vector_store %arg5[%c0_141, %c2_142, %c0_143, %c0_144], %373 {strides = array<i32>} : memref<1x4x16x16xf32, #tpu.memory_space<vmem>>, vector<1x1x16x16xf32>,
    %c36 = arith.constant 36 : index
    %374 = memref.load %arg3[%c36] : memref<48xf32, #tpu.memory_space<smem>>
    %c37 = arith.constant 37 : index
    %375 = memref.load %arg3[%c37] : memref<48xf32, #tpu.memory_space<smem>>
    %c38 = arith.constant 38 : index
    %376 = memref.load %arg3[%c38] : memref<48xf32, #tpu.memory_space<smem>>
    %c0_145 = arith.constant 0 : index
    %c0_146 = arith.constant 0 : index
    %c0_147 = arith.constant 0 : index
    %377 = vector.load %arg6[%c0_145, %c0_146, %c0_147] : memref<4x18x18xf32, #tpu.memory_space<vmem>>, vector<1x16x18xf32>
    %378 = vector.shape_cast %377 : vector<1x16x18xf32> to vector<16x18xf32>
    %379 = vector.broadcast %374 : f32 to vector<16x18xf32>
    %380 = arith.addf %378, %379 : vector<16x18xf32>
    %c0_148 = arith.constant 0 : index
    %c1_149 = arith.constant 1 : index
    %c0_150 = arith.constant 0 : index
    %381 = vector.load %arg6[%c0_148, %c1_149, %c0_150] : memref<4x18x18xf32, #tpu.memory_space<vmem>>, vector<1x16x18xf32>
    %382 = vector.shape_cast %381 : vector<1x16x18xf32> to vector<16x18xf32>
    %383 = vector.broadcast %375 : f32 to vector<16x18xf32>
    %384 = arith.addf %382, %383 : vector<16x18xf32>
    %385 = arith.maximumf %380, %384 : vector<16x18xf32>
    %c0_151 = arith.constant 0 : index
    %c2_152 = arith.constant 2 : index
    %c0_153 = arith.constant 0 : index
    %386 = vector.load %arg6[%c0_151, %c2_152, %c0_153] : memref<4x18x18xf32, #tpu.memory_space<vmem>>, vector<1x16x18xf32>
    %387 = vector.shape_cast %386 : vector<1x16x18xf32> to vector<16x18xf32>
    %388 = vector.broadcast %376 : f32 to vector<16x18xf32>
    %389 = arith.addf %387, %388 : vector<16x18xf32>
    %390 = arith.maximumf %385, %389 : vector<16x18xf32>
    %391 = vector.extract_strided_slice %390 {offsets = [0, 0], sizes = [16, 16], strides = [1, 1]} : vector<16x18xf32> to vector<16x16xf32>
    %392 = vector.broadcast %374 : f32 to vector<16x16xf32>
    %393 = arith.addf %391, %392 : vector<16x16xf32>
    %394 = vector.extract_strided_slice %390 {offsets = [0, 1], sizes = [16, 16], strides = [1, 1]} : vector<16x18xf32> to vector<16x16xf32>
    %395 = vector.broadcast %375 : f32 to vector<16x16xf32>
    %396 = arith.addf %394, %395 : vector<16x16xf32>
    %397 = arith.maximumf %393, %396 : vector<16x16xf32>
    %398 = vector.extract_strided_slice %390 {offsets = [0, 2], sizes = [16, 16], strides = [1, 1]} : vector<16x18xf32> to vector<16x16xf32>
    %399 = vector.broadcast %376 : f32 to vector<16x16xf32>
    %400 = arith.addf %398, %399 : vector<16x16xf32>
    %401 = arith.maximumf %397, %400 : vector<16x16xf32>
    %c39 = arith.constant 39 : index
    %402 = memref.load %arg3[%c39] : memref<48xf32, #tpu.memory_space<smem>>
    %c40 = arith.constant 40 : index
    %403 = memref.load %arg3[%c40] : memref<48xf32, #tpu.memory_space<smem>>
    %c41 = arith.constant 41 : index
    %404 = memref.load %arg3[%c41] : memref<48xf32, #tpu.memory_space<smem>>
    %c1_154 = arith.constant 1 : index
    %c0_155 = arith.constant 0 : index
    %c0_156 = arith.constant 0 : index
    %405 = vector.load %arg6[%c1_154, %c0_155, %c0_156] : memref<4x18x18xf32, #tpu.memory_space<vmem>>, vector<1x16x18xf32>
    %406 = vector.shape_cast %405 : vector<1x16x18xf32> to vector<16x18xf32>
    %407 = vector.broadcast %402 : f32 to vector<16x18xf32>
    %408 = arith.addf %406, %407 : vector<16x18xf32>
    %c1_157 = arith.constant 1 : index
    %c1_158 = arith.constant 1 : index
    %c0_159 = arith.constant 0 : index
    %409 = vector.load %arg6[%c1_157, %c1_158, %c0_159] : memref<4x18x18xf32, #tpu.memory_space<vmem>>, vector<1x16x18xf32>
    %410 = vector.shape_cast %409 : vector<1x16x18xf32> to vector<16x18xf32>
    %411 = vector.broadcast %403 : f32 to vector<16x18xf32>
    %412 = arith.addf %410, %411 : vector<16x18xf32>
    %413 = arith.maximumf %408, %412 : vector<16x18xf32>
    %c1_160 = arith.constant 1 : index
    %c2_161 = arith.constant 2 : index
    %c0_162 = arith.constant 0 : index
    %414 = vector.load %arg6[%c1_160, %c2_161, %c0_162] : memref<4x18x18xf32, #tpu.memory_space<vmem>>, vector<1x16x18xf32>
    %415 = vector.shape_cast %414 : vector<1x16x18xf32> to vector<16x18xf32>
    %416 = vector.broadcast %404 : f32 to vector<16x18xf32>
    %417 = arith.addf %415, %416 : vector<16x18xf32>
    %418 = arith.maximumf %413, %417 : vector<16x18xf32>
    %419 = vector.extract_strided_slice %418 {offsets = [0, 0], sizes = [16, 16], strides = [1, 1]} : vector<16x18xf32> to vector<16x16xf32>
    %420 = vector.broadcast %402 : f32 to vector<16x16xf32>
    %421 = arith.addf %419, %420 : vector<16x16xf32>
    %422 = vector.extract_strided_slice %418 {offsets = [0, 1], sizes = [16, 16], strides = [1, 1]} : vector<16x18xf32> to vector<16x16xf32>
    %423 = vector.broadcast %403 : f32 to vector<16x16xf32>
    %424 = arith.addf %422, %423 : vector<16x16xf32>
    %425 = arith.maximumf %421, %424 : vector<16x16xf32>
    %426 = vector.extract_strided_slice %418 {offsets = [0, 2], sizes = [16, 16], strides = [1, 1]} : vector<16x18xf32> to vector<16x16xf32>
    %427 = vector.broadcast %404 : f32 to vector<16x16xf32>
    %428 = arith.addf %426, %427 : vector<16x16xf32>
    %429 = arith.maximumf %425, %428 : vector<16x16xf32>
    %430 = arith.addf %401, %429 : vector<16x16xf32>
    %c42 = arith.constant 42 : index
    %431 = memref.load %arg3[%c42] : memref<48xf32, #tpu.memory_space<smem>>
    %c43 = arith.constant 43 : index
    %432 = memref.load %arg3[%c43] : memref<48xf32, #tpu.memory_space<smem>>
    %c44 = arith.constant 44 : index
    %433 = memref.load %arg3[%c44] : memref<48xf32, #tpu.memory_space<smem>>
    %c2_163 = arith.constant 2 : index
    %c0_164 = arith.constant 0 : index
    %c0_165 = arith.constant 0 : index
    %434 = vector.load %arg6[%c2_163, %c0_164, %c0_165] : memref<4x18x18xf32, #tpu.memory_space<vmem>>, vector<1x16x18xf32>
    %435 = vector.shape_cast %434 : vector<1x16x18xf32> to vector<16x18xf32>
    %436 = vector.broadcast %431 : f32 to vector<16x18xf32>
    %437 = arith.addf %435, %436 : vector<16x18xf32>
    %c2_166 = arith.constant 2 : index
    %c1_167 = arith.constant 1 : index
    %c0_168 = arith.constant 0 : index
    %438 = vector.load %arg6[%c2_166, %c1_167, %c0_168] : memref<4x18x18xf32, #tpu.memory_space<vmem>>, vector<1x16x18xf32>
    %439 = vector.shape_cast %438 : vector<1x16x18xf32> to vector<16x18xf32>
    %440 = vector.broadcast %432 : f32 to vector<16x18xf32>
    %441 = arith.addf %439, %440 : vector<16x18xf32>
    %442 = arith.maximumf %437, %441 : vector<16x18xf32>
    %c2_169 = arith.constant 2 : index
    %c2_170 = arith.constant 2 : index
    %c0_171 = arith.constant 0 : index
    %443 = vector.load %arg6[%c2_169, %c2_170, %c0_171] : memref<4x18x18xf32, #tpu.memory_space<vmem>>, vector<1x16x18xf32>
    %444 = vector.shape_cast %443 : vector<1x16x18xf32> to vector<16x18xf32>
    %445 = vector.broadcast %433 : f32 to vector<16x18xf32>
    %446 = arith.addf %444, %445 : vector<16x18xf32>
    %447 = arith.maximumf %442, %446 : vector<16x18xf32>
    %448 = vector.extract_strided_slice %447 {offsets = [0, 0], sizes = [16, 16], strides = [1, 1]} : vector<16x18xf32> to vector<16x16xf32>
    %449 = vector.broadcast %431 : f32 to vector<16x16xf32>
    %450 = arith.addf %448, %449 : vector<16x16xf32>
    %451 = vector.extract_strided_slice %447 {offsets = [0, 1], sizes = [16, 16], strides = [1, 1]} : vector<16x18xf32> to vector<16x16xf32>
    %452 = vector.broadcast %432 : f32 to vector<16x16xf32>
    %453 = arith.addf %451, %452 : vector<16x16xf32>
    %454 = arith.maximumf %450, %453 : vector<16x16xf32>
    %455 = vector.extract_strided_slice %447 {offsets = [0, 2], sizes = [16, 16], strides = [1, 1]} : vector<16x18xf32> to vector<16x16xf32>
    %456 = vector.broadcast %433 : f32 to vector<16x16xf32>
    %457 = arith.addf %455, %456 : vector<16x16xf32>
    %458 = arith.maximumf %454, %457 : vector<16x16xf32>
    %459 = arith.addf %430, %458 : vector<16x16xf32>
    %c45 = arith.constant 45 : index
    %460 = memref.load %arg3[%c45] : memref<48xf32, #tpu.memory_space<smem>>
    %c46 = arith.constant 46 : index
    %461 = memref.load %arg3[%c46] : memref<48xf32, #tpu.memory_space<smem>>
    %c47 = arith.constant 47 : index
    %462 = memref.load %arg3[%c47] : memref<48xf32, #tpu.memory_space<smem>>
    %c3_172 = arith.constant 3 : index
    %c0_173 = arith.constant 0 : index
    %c0_174 = arith.constant 0 : index
    %463 = vector.load %arg6[%c3_172, %c0_173, %c0_174] : memref<4x18x18xf32, #tpu.memory_space<vmem>>, vector<1x16x18xf32>
    %464 = vector.shape_cast %463 : vector<1x16x18xf32> to vector<16x18xf32>
    %465 = vector.broadcast %460 : f32 to vector<16x18xf32>
    %466 = arith.addf %464, %465 : vector<16x18xf32>
    %c3_175 = arith.constant 3 : index
    %c1_176 = arith.constant 1 : index
    %c0_177 = arith.constant 0 : index
    %467 = vector.load %arg6[%c3_175, %c1_176, %c0_177] : memref<4x18x18xf32, #tpu.memory_space<vmem>>, vector<1x16x18xf32>
    %468 = vector.shape_cast %467 : vector<1x16x18xf32> to vector<16x18xf32>
    %469 = vector.broadcast %461 : f32 to vector<16x18xf32>
    %470 = arith.addf %468, %469 : vector<16x18xf32>
    %471 = arith.maximumf %466, %470 : vector<16x18xf32>
    %c3_178 = arith.constant 3 : index
    %c2_179 = arith.constant 2 : index
    %c0_180 = arith.constant 0 : index
    %472 = vector.load %arg6[%c3_178, %c2_179, %c0_180] : memref<4x18x18xf32, #tpu.memory_space<vmem>>, vector<1x16x18xf32>
    %473 = vector.shape_cast %472 : vector<1x16x18xf32> to vector<16x18xf32>
    %474 = vector.broadcast %462 : f32 to vector<16x18xf32>
    %475 = arith.addf %473, %474 : vector<16x18xf32>
    %476 = arith.maximumf %471, %475 : vector<16x18xf32>
    %477 = vector.extract_strided_slice %476 {offsets = [0, 0], sizes = [16, 16], strides = [1, 1]} : vector<16x18xf32> to vector<16x16xf32>
    %478 = vector.broadcast %460 : f32 to vector<16x16xf32>
    %479 = arith.addf %477, %478 : vector<16x16xf32>
    %480 = vector.extract_strided_slice %476 {offsets = [0, 1], sizes = [16, 16], strides = [1, 1]} : vector<16x18xf32> to vector<16x16xf32>
    %481 = vector.broadcast %461 : f32 to vector<16x16xf32>
    %482 = arith.addf %480, %481 : vector<16x16xf32>
    %483 = arith.maximumf %479, %482 : vector<16x16xf32>
    %484 = vector.extract_strided_slice %476 {offsets = [0, 2], sizes = [16, 16], strides = [1, 1]} : vector<16x18xf32> to vector<16x16xf32>
    %485 = vector.broadcast %462 : f32 to vector<16x16xf32>
    %486 = arith.addf %484, %485 : vector<16x16xf32>
    %487 = arith.maximumf %483, %486 : vector<16x16xf32>
    %488 = arith.addf %459, %487 : vector<16x16xf32>
    %c3_181 = arith.constant 3 : index
    %489 = memref.load %arg4[%c3_181] : memref<4xf32, #tpu.memory_space<smem>>
    %490 = vector.broadcast %489 : f32 to vector<16x16xf32>
    %491 = arith.addf %488, %490 : vector<16x16xf32>
    %c0_182 = arith.constant 0 : index
    %c3_183 = arith.constant 3 : index
    %c0_184 = arith.constant 0 : index
    %c0_185 = arith.constant 0 : index
    %492 = vector.load %arg5[%c0_182, %c3_183, %c0_184, %c0_185] : memref<1x4x16x16xf32, #tpu.memory_space<vmem>>, vector<1x1x16x16xf32>
    %493 = vector.shape_cast %492 : vector<1x1x16x16xf32> to vector<16x16xf32>
    %494 = vector.shape_cast %491 : vector<16x16xf32> to vector<1x1x16x16xf32>
    tpu.vector_store %arg5[%c0_182, %c3_183, %c0_184, %c0_185], %494 {strides = array<i32>} : memref<1x4x16x16xf32, #tpu.memory_space<vmem>>, vector<1x1x16x16xf32>,
    return
  }
  func.func @transform_0(%arg0: i32, %arg1: i32) -> (i32, i32, i32, i32) {
    %c0_i32 = arith.constant 0 : i32
    %c0_i32_0 = arith.constant 0 : i32
    %c0_i32_1 = arith.constant 0 : i32
    %c0_i32_2 = arith.constant 0 : i32
    return %arg0, %c0_i32, %c0_i32_0, %c0_i32_1 : i32, i32, i32, i32
  }
  func.func @transform_1(%arg0: i32, %arg1: i32) -> i32 {
    %c0_i32 = arith.constant 0 : i32
    %c0_i32_0 = arith.constant 0 : i32
    return %c0_i32 : i32
  }
  func.func @transform_2(%arg0: i32, %arg1: i32) -> i32 {
    %c0_i32 = arith.constant 0 : i32
    %c0_i32_0 = arith.constant 0 : i32
    return %c0_i32 : i32
  }
  func.func @transform_3(%arg0: i32, %arg1: i32) -> (i32, i32, i32, i32) {
    %c0_i32 = arith.constant 0 : i32
    %c0_i32_0 = arith.constant 0 : i32
    %c0_i32_1 = arith.constant 0 : i32
    return %arg0, %arg1, %c0_i32, %c0_i32_0 : i32, i32, i32, i32
  }
}

</mosaic_0001>

<bundles_post_ra>
// kernel: semi_conv2d_parabolic.1
= control target key start
LH: loop header
LB: loop body
LE: loop exit
PB: predicated region body
PF: predicated region fallthrough
CT: control target
= control target key end

     0   :  { %s2812_s0 = inlined_call_operand.hbm [shape: f32[2,4,16,16], index: 0, kind: input, shape index: {}]   ;;  %s2813_s1 = inlined_call_operand.vmem [shape: f32[48], index: 1, kind: input, shape index: {}]   ;;  %s2814_s2 = inlined_call_operand.vmem [shape: f32[4], index: 2, kind: input, shape index: {}]   ;;  %s2815_s3 = inlined_call_operand.hbm [shape: f32[2,4,16,16], index: 3, kind: output, shape index: {}]  }
   0x1   :  { %2915 = sst [smem:[#allocation79_spill]] %s2812_s0 }
   0x2   :  { %2916 = sst [smem:[#allocation80_spill]] %s2813_s1 }
   0x3   :  { %2917 = sst [smem:[#allocation81_spill]] %s2814_s2 }
   0x4   :  { %2918 = sst [smem:[#allocation82_spill]] %s2815_s3 }
   0x5   :  { %8 = vsyncpa [#allocation4], 0 }
   0x6   :  { %10 = vsyncpa [#allocation4 + $0x1], 0 }
   0x7   :  { %11 = vsyncpa [#allocation6], 0 }
   0x8   :  { %12 = vsyncpa [#allocation9], 0 }
   0x9   :  { %13 = vsyncpa [#allocation5], 0 }
   0xa   :  { %15 = vsyncpa [#allocation5 + $0x1], 0  ;;  %s1601_s12 = smov 0   ;;  %s1603_s13 = smov 0  }
   0xb   :  { %s1605_s14 = smov 0   ;;  %s1607_s15 = smov 0  }
   0xc   :  { %s1609_s16 = smov 0   ;;  %s1611_s17 = smov 0  }
   0xd LB: > { %2919 = sst [smem:[#allocation15_spill]] %s1547_s12  ;;  %s1253_s18 = sadd.s32 4294967295, %s1567_s17   ;;  %s1567_s17 = sphi %s1611_s17, %s21_s17   ;;  %s1563_s16 = sphi %s1609_s16, %s3085_s16   ;;  %s1559_s15 = sphi %s1607_s15, %s3084_s15   ;;  %s1555_s14 = sphi %s1605_s14, %s3083_s14   ;;  %s1551_s13 = sphi %s1603_s13, %s3082_s13   ;;  %s1547_s12 = sphi %s1601_s12, %s3081_s12  }
   0xe   : > { %2920 = sst [smem:[#allocation16_spill]] %s1551_s13  ;;  %s1254_s19 = sadd.s32 4294967294, %s1567_s17  }
   0xf   : > { %2921 = sst [smem:[#allocation17_spill]] %s1555_s14  ;;  %s40_s20 = sadd.s32 1, %s1555_s14 }
  0x10   : > { %2922 = sst [smem:[#allocation18_spill]] %s1559_s15  ;;  %p47_p0 = scmp.ne.s32.totalorder %s1555_s14, %s1551_s13 }
  0x11   : > { %2923 = sst [smem:[#allocation19_spill]] %s1563_s16  ;;  %p48_p1 = scmp.eq.s32.totalorder %s1567_s17, 0 }
  0x12   : > { %2924 = sst [smem:[#allocation20_spill]] %s1567_s17  ;;  %p53_p2 = scmp.ne.s32.totalorder %s1551_s13, %s1547_s12 }
  0x13   : > { %p1639_p3 = scmp.eq.s32.totalorder %s1253_s18, 0  ;;  %p121_p4 = scmp.eq.s32.totalorder %s1253_s18, 1 }
  0x14   : > { %p1643_p5 = por %p48_p1, %p47_p0  ;;  %p127_p6 = scmp.eq.s32.totalorder %s1254_s19, 1 }
  0x15   : > { %s2925_s21 = scalar_select %p1639_p3, 1, 0 }
  0x16   : > { %p1649_p7 = por %p1639_p3, %p53_p2  ;;  %p1653_p8 = por %p121_p4, %p47_p0 }
  0x17   : > { %p1657_p9 = por %p127_p6, %p53_p2  ;;  %p1255_p10 = scmp.ge.s32.totalorder %s1567_s17, 1 }
  0x18   : > { %s2927_s23 = scalar_select %p1649_p7, 1, 0 }
  0x19   : > { %s2928_s24 = scalar_select %p1653_p8, 1, 0 }
  0x1a   : > { %s2930_s25 = scalar_select %p1657_p9, 1, 0 }
  0x1b   : > { %2929 = sst [smem:[#allocation21_spill]] %s2928_s24  ;;  %p134_p11 = scmp.lt.s32.totalorder %s1567_s17, 3 }
  0x1c   : > { %2931 = sst [smem:[#allocation22_spill]] %s2930_s25  ;;  %p1359_p0 = scmp.lt.s32.totalorder %s1567_s17, 2 }
  0x1d   : > { %s2932_s1 = sld [smem:[#allocation80_spill]]  ;;  %p1666_p12 = pnand %p1255_p10, %p134_p11 }
  0x1e   : > { %s2934_s2 = sld [smem:[#allocation81_spill]]  ;;  %p1679_p2 = pnand %p1359_p0, %p1643_p5 }
  0x1f   : > { %s2933_s29 = scalar_select %p1666_p12, 1, 0 }
  0x20   : > { %p1342_p1 = pneg %p1666_p12 }
  0x21   : > { %s2935_s6 = scalar_select %p1679_p2, 1, 0 }
  0x22   : > { %p1685_p4 = pnand %p1342_p1, %p1639_p3 }
  0x23   : > { %s147_s28 = sshll.u32 %s2932_s1, 4  ;;  %s148_s28 = int_to_ptr.vmem [resolvable:$true] %s147_s28 }
  0x24   : > { %s158_s5 = sshll.u32 %s2934_s2, 4  ;;  %s1421_s8 = scalar_lea.vmem %s148_s28, 16  ;;  %s159_s5 = int_to_ptr.vmem [resolvable:$true] %s158_s5 }
  0x25   : > { %p1422_p6 = scmp.ne.s32.totalorder %s148_s28, %s1421_s8  ;;  %p1423_p10 = pneg %p1685_p4 }
  0x26   : > { %p1429_p9 = scmp.lt.s32.totalorder %s148_s28, %s148_s28  ;;  %p1430_p8 = scmp.lt.s32.totalorder %s1421_s8, %s1421_s8 }
  0x27   : > { %p1424_p11 = pnand %p1423_p10, %p1422_p6 }
  0x28   : > { %p1431_p7 = por %p1430_p8, %p1429_p9 }
  0x29   : > { %p1425_p13 = pneg %p1424_p11 }
  0x2b   : > { %p1432_p5 = pnand %p1431_p7, %p1425_p13 }
  0x2d   : > { %1435 = shalt.err (!%p1432_p5)
}
  0x2e   : > { %s1569_s9 = smov [#allocation7]   ;;  %s1436_s10 = scalar_lea.vmem %s159_s5, 16 }
  0x2f   : > { %1345 = dma.vmem_to_smem (!%p1685_p4), %s148_s28, 16, %s1569_s9, [#allocation6]  }
  0x30   : > { %p1437_p0 = scmp.ne.s32.totalorder %s159_s5, %s1436_s10  ;;  %p1444_p12 = scmp.lt.s32.totalorder %s159_s5, %s159_s5 }
  0x31   : > { %p1445_p2 = scmp.lt.s32.totalorder %s1436_s10, %s1436_s10 }
  0x32   : > { %p1439_p1 = pnand %p1437_p0, %p1423_p10 }
  0x33   : > { %p1446_p6 = por %p1445_p2, %p1444_p12 }
  0x34   : > { %p1440_p3 = pneg %p1439_p1 }
  0x36   : > { %p1447_p11 = pnand %p1446_p6, %p1440_p3 }
  0x38   : > { %1450 = shalt.err (!%p1447_p11)
}
  0x39   : > { %s1570_s11 = smov [#allocation8]   ;;  %s33_s18 = sadd.s32 1, %s1563_s16 }
  0x3a   : > { %1348 = dma.vmem_to_smem (!%p1685_p4), %s159_s5, 16, %s1570_s11, [#allocation9]  }
  0x3b   : > { %s169_s19 = sand.u32 1, %s1555_s14   ;;  %p35_p7 = scmp.ge.s32.totalorder %s33_s18, 2 }
  0x3c   : > { %s1259_s22 = sshll.u32 %s169_s19, 6  ;;  %s1328_s26 = sshll.u32 %s1563_s16, 10 }
  0x3d   : > { %s3087_s18 = smov (%p35_p7, %s33_s18), 0  ;;  %s2938_s0 = sld [smem:[#allocation79_spill]] }
  0x3e   : > { %2937 = sst [smem:[#allocation23_spill]] %s3087_s18  ;;  %s37_s4 = ssub.s32 %s1563_s16, %s3087_s18 }
  0x3f   : > { %s173_s7 = scalar_lea.vmem [#allocation3], %s1259_s22  ;;  %p38_p3 = scmp.eq.s32.totalorder %s37_s4, 0 }
  0x40   : > { %s180_s8 = sshll.u32 %s173_s7, 4  ;;  %s170_s5 = scalar_lea.sflag [#allocation4], %s169_s19  ;;  %s181_s8 = int_to_ptr.vmem [resolvable:$true] %s180_s8 }
  0x41   : > { %s1708_s9 = scalar_select %p38_p3, %s1555_s14, %s40_s20  }
  0x42   : > { %p2940_p8 = scmp.ne.s32.totalorder %s2935_s6, 0  ;;  %s1464_s10 = scalar_lea.vmem %s181_s8, 1024 }
  0x43   : > { %s179_s30 = scalar_lea.hbm %s2938_s0, %s1328_s26  ;;  %2939 = sst [smem:[#allocation24_spill]] %s1708_s9 }
  0x44   : > { %p1453_p9 = pneg %p2940_p8  ;;  %p1465_p12 = scmp.ne.s32.totalorder %s181_s8, %s1464_s10 }
  0x45   : > { %s1571_s11 = smov [#allocation3]  }
  0x46   : > { %p1467_p13 = pnand %p1465_p12, %p1453_p9  ;;  %s1469_s1 = sshll.u32 %s1571_s11, 4  ;;  %s1470_s1 = int_to_ptr.vmem [resolvable:$false] %s1469_s1 }
  0x47   : > { %s1471_s27 = scalar_lea.vmem %s1470_s1, 2048  ;;  %p1472_p4 = scmp.lt.s32.totalorder %s181_s8, %s1470_s1 }
  0x48   : > { %p1468_p2 = pneg %p1467_p13  ;;  %p1473_p10 = scmp.lt.s32.totalorder %s1471_s27, %s1464_s10 }
  0x4a   : > { %p1474_p5 = por %p1473_p10, %p1472_p4 }
  0x4c   : > { %p1475_p0 = pnand %p1474_p5, %p1468_p2 }
  0x4e   : > { %1478 = shalt.err (!%p1475_p0)
}
  0x4f   : > { %s1572_s22 = smov 128   ;;  %s1573_s20 = smov 8  }
  0x50   : > { %1352 = dma.hbm_to_vmem [thread:$0]  (!%p2940_p8), %s179_s30, 1024, %s181_s8, %s170_s5, %s1572_s22, %s1572_s22, %s1573_s20  }
  0x51   : > { %p2941_p1 = scmp.ne.s32.totalorder %s2933_s29, 0 }
  0x53   : > { %192 = sbr.rel (%p2941_p1) target bundleno = 496 (0x1f0), region = 32 }
  0x58   : > { %s1717_s19 = sand.u32 1, %s1551_s13   ;;  %p2943_p6 = scmp.ne.s32.totalorder %s2927_s23, 0 }
  0x59   : > { %2942 = sst [smem:[#allocation25_spill]] %s1717_s19  ;;  %s2822_s1 = sshll.u32 %s1717_s19, 6 }
  0x5a   : > { %s195_s26 = scalar_lea.sflag [#allocation4], %s1717_s19  ;;  %s1723_s28 = scalar_lea.vmem [#allocation3], %s2822_s1 }
  0x5b   : > { %1530 = dma.done.wait (%p2943_p6), %s195_s26, 1024  }
  0x5c   : > { %1532 = vsyncadd (%p2943_p6), %s195_s26, 4294966272  ;;  %p2944_p11 = scmp.ne.s32.totalorder %s2925_s21, 0 }
  0x5e   : > { %1534 = dma.done.wait (%p2944_p11), [#allocation6], 16  }
  0x5f   : > { %1536 = vsyncadd (%p2944_p11), [#allocation6], 4294967280 }
  0x60   : > { %1538 = dma.done.wait (%p2944_p11), [#allocation9], 16  }
  0x61   : > { %1540 = vsyncadd (%p2944_p11), [#allocation9], 4294967280 }
  0x62   : > { %211 = sfence }
  0x63   : > { %v258_v0 = vld [vmem:[%s1723_s28] sm:$0xff]  ;;  %v260_v1 = vld [vmem:[%s1723_s28 + $0x10] sm:$0xff]  ;;  %s1574_s23 = smov 1   ;;  %vm240_vm0 = vcmask 7168   ;;  %vm249_vm1 = vcmask 146568   ;;  %vm231_vm2 = vcmask 139264  }
  0x64   : > { %274 = vrot.lane.b32.xlu0 %v258_v0, %s1574_s23  ;;  %278 = vrot.lane.b32.xlu1 %v260_v1, %s1574_s23  ;;  %v259_v2 = vld [vmem:[%s1723_s28 + $0x8] sm:$0xff]  ;;  %v261_v3 = vld [vmem:[%s1723_s28 + $0x18] sm:$0xff]  ;;  %v1575_v4 = vmov -inf   ;;  %s1769_s21 = sld [smem:[#allocation7]]  ;;  %vm298_vm3 = vcmask 138248   ;;  %vm512_vm4 = vcmask 130048  }
  0x65   : > { %241 = vst.msk [vmem:[#allocation2 + $0x1] sm:$0xff] %vm240_vm0, %v1575_v4  ;;  %242 = vst.msk [vmem:[#allocation2 + $0x9] sm:$0xff] %vm240_vm0, %v1575_v4  ;;  %v263_v5 = vld [vmem:[%s1723_s28 + $0x28] sm:$0xff]  ;;  %v262_v6 = vld [vmem:[%s1723_s28 + $0x20] sm:$0xff]  ;;  %s1771_s29 = sld [smem:[#allocation7 + $0x1]] }
  0x66   : > { %243 = vst.msk [vmem:[#allocation2 + $0x19] sm:$0xff] %vm240_vm0, %v1575_v4  ;;  %244 = vst.msk [vmem:[#allocation2 + $0x21] sm:$0xff] %vm240_vm0, %v1575_v4  ;;  %v265_v7 = vld [vmem:[%s1723_s28 + $0x38] sm:$0xff]  ;;  %v264_v8 = vld [vmem:[%s1723_s28 + $0x30] sm:$0xff]  ;;  %s1773_s6 = sld [smem:[#allocation7 + $0x2]] }
  0x67   : > { %245 = vst.msk [vmem:[#allocation2 + $0x31] sm:$0xff] %vm240_vm0, %v1575_v4  ;;  %246 = vst.msk [vmem:[#allocation2 + $0x39] sm:$0xff] %vm240_vm0, %v1575_v4  ;;  %s1775_s30 = sld [smem:[#allocation7 + $0x3]] }
  0x68   : > { %247 = vst.msk [vmem:[#allocation2 + $0x49] sm:$0xff] %vm240_vm0, %v1575_v4  ;;  %248 = vst.msk [vmem:[#allocation2 + $0x51] sm:$0xff] %vm240_vm0, %v1575_v4  ;;  %276 = vrot.lane.b32.xlu0 %v259_v2, %s1574_s23  ;;  %280 = vrot.lane.b32.xlu1 %v261_v3, %s1574_s23  ;;  %s1777_s4 = sld [smem:[#allocation7 + $0x4]] }
  0x69   : > { %232 = vst.msk [vmem:[#allocation2] sm:$0x1] %vm231_vm2, %v1575_v4  ;;  %233 = vst.msk [vmem:[#allocation2 + $0x18] sm:$0x1] %vm231_vm2, %v1575_v4  ;;  %s1779_s7 = sld [smem:[#allocation7 + $0x5]] }
  0x6a   : > { %234 = vst.msk [vmem:[#allocation2 + $0x30] sm:$0x1] %vm231_vm2, %v1575_v4  ;;  %235 = vst.msk [vmem:[#allocation2 + $0x48] sm:$0x1] %vm231_vm2, %v1575_v4  ;;  %s1781_s8 = sld [smem:[#allocation7 + $0x6]]  ;;  %v1838_v13 = vstv %s1769_s21 }
  0x6b   : > { %236 = vst.msk [vmem:[#allocation2 + $0x11] sm:$0x1] %vm231_vm2, %v1575_v4  ;;  %237 = vst.msk [vmem:[#allocation2 + $0x29] sm:$0x1] %vm231_vm2, %v1575_v4  ;;  %s1783_s5 = sld [smem:[#allocation7 + $0x7]]  ;;  %v1841_v14 = vstv %s1771_s29 }
  0x6c   : > { %238 = vst.msk [vmem:[#allocation2 + $0x41] sm:$0x1] %vm231_vm2, %v1575_v4  ;;  %239 = vst.msk [vmem:[#allocation2 + $0x59] sm:$0x1] %vm231_vm2, %v1575_v4  ;;  %284 = vrot.lane.b32.xlu1 %v263_v5, %s1574_s23  ;;  %282 = vrot.lane.b32.xlu0 %v262_v6, %s1574_s23  ;;  %s1785_s10 = sld [smem:[#allocation7 + $0x8]]  ;;  %v1844_v15 = vstv %s1773_s6 }
  0x6d   : > { %250 = vst.msk [vmem:[#allocation2 + $0x1] sm:$0xff] %vm249_vm1, %v1575_v4  ;;  %252 = vst.msk [vmem:[#allocation2 + $0x19] sm:$0xff] %vm249_vm1, %v1575_v4  ;;  %s1787_s11 = sld [smem:[#allocation7 + $0xc]]  ;;  %v1849_v16 = vstv %s1775_s30 }
  0x6e   : > { %251 = vst.msk [vmem:[#allocation2 + $0x9] sm:$0xff] %vm249_vm1, %v1575_v4  ;;  %253 = vst.msk [vmem:[#allocation2 + $0x21] sm:$0xff] %vm249_vm1, %v1575_v4  ;;  %s1789_s27 = sld [smem:[#allocation7 + $0xd]]  ;;  %v1852_v17 = vstv %s1777_s4 }
  0x6f   : > { %254 = vst.msk [vmem:[#allocation2 + $0x31] sm:$0xff] %vm249_vm1, %v1575_v4  ;;  %255 = vst.msk [vmem:[#allocation2 + $0x39] sm:$0xff] %vm249_vm1, %v1575_v4  ;;  %s1791_s22 = sld [smem:[#allocation7 + $0xe]]  ;;  %v1855_v18 = vstv %s1779_s7 }
  0x70   : > { %256 = vst.msk [vmem:[#allocation2 + $0x49] sm:$0xff] %vm249_vm1, %v1575_v4  ;;  %257 = vst.msk [vmem:[#allocation2 + $0x51] sm:$0xff] %vm249_vm1, %v1575_v4  ;;  %288 = vrot.lane.b32.xlu1 %v265_v7, %s1574_s23  ;;  %286 = vrot.lane.b32.xlu0 %v264_v8, %s1574_s23  ;;  %s1793_s20 = sld [smem:[#allocation7 + $0xf]]  ;;  %v1858_v19 = vstv %s1781_s8 }
  0x71   : > { %s1795_s26 = sld [smem:[#allocation7 + $0x10]]  ;;  %2948 = vst [vmem:[#allocation29_spill] sm:$0xff] %v1838_v13  ;;  %2949 = vst [vmem:[#allocation30_spill] sm:$0xff] %v1849_v16  ;;  %v1867_v24 = vstv %s1783_s5 }
  0x72   : > { %s1797_s28 = sld [smem:[#allocation7 + $0x9]]  ;;  %2950 = vst [vmem:[#allocation31_spill] sm:$0xff] %v1858_v19  ;;  %v1870_v25 = vstv %s1785_s10 }
  0x73   : > { %s1799_s23 = sld [smem:[#allocation7 + $0xa]]  ;;  %v1873_v26 = vstv %s1787_s11 }
  0x74   : > { %s1801_s1 = sld [smem:[#allocation7 + $0xb]]  ;;  %2951 = vst [vmem:[#allocation32_spill] sm:$0xff] %v1873_v26  ;;  %v1876_v27 = vstv %s1789_s27 }
  0x75   : > { %s1803_s0 = sld [smem:[#allocation7 + $0x11]]  ;;  %v1891_v32 = vstv %s1791_s22 }
  0x76   : > { %s1805_s2 = sld [smem:[#allocation7 + $0x12]]  ;;  %v1894_v33 = vstv %s1793_s20 }
  0x77   : > { %s1807_s18 = sld [smem:[#allocation7 + $0x13]]  ;;  %2954 = vst [vmem:[#allocation35_spill] sm:$0xff] %v1894_v33  ;;  %v1908_v37 = vstv %s1795_s26 }
  0x78   : > { %s1809_s16 = sld [smem:[#allocation7 + $0x14]]  ;;  %v1899_v34 = vstv %s1797_s28 }
  0x79   : > { %s1811_s9 = sld [smem:[#allocation7 + $0x18]]  ;;  %2955 = vst [vmem:[#allocation36_spill] sm:$0xff] %v1899_v34  ;;  %v1902_v35 = vstv %s1799_s23 }
  0x7a   : > { %s1813_s14 = sld [smem:[#allocation7 + $0x19]]  ;;  %v1905_v36 = vstv %s1801_s1 }
  0x7b   : > { %s1815_s13 = sld [smem:[#allocation7 + $0x15]]  ;;  %v1913_v38 = vstv %s1803_s0 }
  0x7c   : > { %s1817_s17 = sld [smem:[#allocation7 + $0x16]]  ;;  %v1916_v39 = vstv %s1805_s2 }
  0x7d   : > { %s1819_s25 = sld [smem:[#allocation7 + $0x17]]  ;;  %2956 = vst [vmem:[#allocation37_spill] sm:$0xff] %v1916_v39  ;;  %v1919_v40 = vstv %s1807_s18 }
  0x7e   : > { %s1821_s12 = sld [smem:[#allocation7 + $0x1a]]  ;;  %v1922_v41 = vstv %s1809_s16 }
  0x7f   : > { %s1825_s3 = sld [smem:[#allocation7 + $0x1b]]  ;;  %v1937_v49 = vstv %s1811_s9 }
  0x80   : > { %s1827_s24 = sld [smem:[#allocation7 + $0x1c]]  ;;  %v1940_v50 = vstv %s1813_s14 }
  0x81   : > { %s1829_s15 = sld [smem:[#allocation7 + $0x1d]]  ;;  %2959 = vst [vmem:[#allocation40_spill] sm:$0xff] %v1940_v50  ;;  %v1965_v60 = vstv %s1815_s13 }
  0x82   : > { %s1831_s19 = sld [smem:[#allocation7 + $0x24]]  ;;  %2962 = vst [vmem:[#allocation41_spill] sm:$0xff] %v1965_v60  ;;  %v1968_v61 = vstv %s1817_s17 }
  0x83   : > { %s1878_s21 = sld [smem:[#allocation7 + $0x28]]  ;;  %2963 = vst [vmem:[#allocation42_spill] sm:$0xff] %v1968_v61  ;;  %v1971_v62 = vstv %s1819_s25  ;;  %s1577_s25 = smov 126  }
  0x84   : > { %2945 = sst [smem:[#allocation26_spill]] %s1821_s12  ;;  %2964 = vst [vmem:[#allocation43_spill] sm:$0xff] %v1971_v62 }
  0x85   : > { %s1835_s12 = sld [smem:[#allocation7 + $0x25]]  ;;  %v1993_v7 = vstv %s1825_s3 }
  0x86   : > { %s1896_s29 = sld [smem:[#allocation7 + $0x29]]  ;;  %v1996_v8 = vstv %s1827_s24  ;;  %s1576_s24 = smov 127  }
  0x87   : > { %2946 = sst [smem:[#allocation27_spill]] %s1829_s15  ;;  %2968 = vst [vmem:[#allocation46_spill] sm:$0xff] %v1996_v8 }
  0x88   : > { %2947 = sst [smem:[#allocation28_spill]] %s1831_s19 }
  0x89   : > { %s1846_s15 = sld [smem:[#allocation7 + $0x26]] }
  0x8a   : > { %s1860_s19 = sld [smem:[#allocation7 + $0x27]] }
  0x8b   : > { %s1910_s6 = sld [smem:[#allocation7 + $0x1e]] }
  0x8c   : > { %s1924_s30 = sld [smem:[#allocation7 + $0x1f]] }
  0x8d   : > { %s1942_s0 = sld [smem:[#allocation7 + $0x20]] }
  0x8e   : > { %s1956_s2 = sld [smem:[#allocation7 + $0x2a]] }
  0x8f   : > { %s2960_s14 = sld [smem:[#allocation26_spill]] }
  0x90   : > { %s2961_s16 = sld [smem:[#allocation27_spill]] }
  0x91   : > { %s1973_s18 = sld [smem:[#allocation7 + $0x2b]] }
  0x92   : > { %s2966_s9 = sld [smem:[#allocation28_spill]] }
  0x93   : > { %s1983_s13 = sld [smem:[#allocation7 + $0x2c]] }
  0x94   : > { %s2001_s17 = sld [smem:[#allocation7 + $0x21]] }
  0x95   : > { %v1990_v6 = vstv %s2960_s14  ;;  %s2017_s3 = sld [smem:[#allocation7 + $0x22]] }
  0x96   : > { %2967 = vst [vmem:[#allocation45_spill] sm:$0xff] %v1990_v6  ;;  %s2110_s1 = sld [smem:[#allocation7 + $0x2f]] }
  0x97   : > { %s508_s4 = sld [smem:[#allocation8]] }
  0x98   : > { %s3069_s7 = sld [smem:[#allocation25_spill]] }
  0x99   : > { %s1290_s10 = sld [smem:[#allocation8 + $0x1]] }
  0x9a   : > { %s2730_s11 = sld [smem:[#allocation8 + $0x2]] }
  0x9b   : > { %s2735_s27 = sld [smem:[#allocation8 + $0x3]] }
  0x9c   : > { %s3071_s22 = sld [smem:[#allocation18_spill]] }
  0x9d   : > { %s3073_s20 = sld [smem:[#allocation21_spill]] }
  0x9e   : > { %s3070_s8 = sshll.u32 %s3069_s7, 6 }
  0x9f   : > { %s2701_s5 = scalar_lea.vmem [#allocation10], %s3070_s8 }
  0xa0   : > { %s1147_s28 = sshll.u32 %s2701_s5, 4  ;;  %s2760_s28 = int_to_ptr.vmem [resolvable:$true] %s1147_s28 }
  0xa2   : > { %s1329_s26 = sshll.u32 %s3071_s22, 10 }
  0xa3   : > { %p3075_p3 = scmp.ne.s32.totalorder %s3073_s20, 0 }
  0xd6   : > { %v275_v9 = vpop.permute.xlu0 %274  ;;  %v279_v10 = vpop.permute.xlu1 %278 }
  0xd7   : > { %299 = vst.msk [vmem:[#allocation2 + $0x1] sm:$0xff] %vm298_vm3, %v275_v9  ;;  %301 = vst.msk [vmem:[#allocation2 + $0x19] sm:$0xff] %vm298_vm3, %v279_v10  ;;  %v1999_v9 = vstv %s2961_s16 }
  0xd8   : > { %2969 = vst [vmem:[#allocation47_spill] sm:$0xff] %v1999_v9 }
  0xda   : > { %v277_v11 = vpop.permute.xlu0 %276  ;;  %v281_v12 = vpop.permute.xlu1 %280 }
  0xdb   : > { %300 = vst.msk [vmem:[#allocation2 + $0x9] sm:$0xff] %vm298_vm3, %v277_v11  ;;  %302 = vst.msk [vmem:[#allocation2 + $0x21] sm:$0xff] %vm298_vm3, %v281_v12 }
  0xde   : > { %v285_v20 = vpop.permute.xlu1 %284  ;;  %v283_v21 = vpop.permute.xlu0 %282  ;;  %v1862_v22 = vld [vmem:[#allocation2] sm:$0xff]  ;;  %v1886_v30 = vld [vmem:[#allocation2 + $0x18] sm:$0xff] }
  0xdf   : > { %v1864_v23 = vld [vmem:[#allocation2 + $0x1] sm:$0xff]  ;;  %304 = vst.msk [vmem:[#allocation2 + $0x39] sm:$0xff] %vm298_vm3, %v285_v20  ;;  %303 = vst.msk [vmem:[#allocation2 + $0x31] sm:$0xff] %vm298_vm3, %v283_v21  ;;  %v313_v28 = vadd.f32 %v1838_v13, %v1862_v22  ;;  %v1888_v31 = vld [vmem:[#allocation2 + $0x19] sm:$0xff]  ;;  %v362_v47 = vadd.f32 %v1849_v16, %v1886_v30 }
  0xe0   : > { %v318_v29 = vadd.f32 %v1841_v14, %v1864_v23  ;;  %2952 = vst [vmem:[#allocation33_spill] sm:$0xff] %v1886_v30  ;;  %2953 = vst [vmem:[#allocation34_spill] sm:$0xff] %v1888_v31  ;;  %v367_v48 = vadd.f32 %v1852_v17, %v1888_v31 }
  0xe2   : > { %v1926_v42 = vld [vmem:[#allocation2 + $0x9] sm:$0xff]  ;;  %v289_v45 = vpop.permute.xlu1 %288  ;;  %v287_v46 = vpop.permute.xlu0 %286  ;;  %v320_v52 = vmax.f32 %v313_v28, %v318_v29  ;;  %v1954_v56 = vld [vmem:[#allocation2 + $0x21] sm:$0xff]  ;;  %v369_v12 = vmax.f32 %v362_v47, %v367_v48  ;;  %v2012_v29 = vstv %s2966_s9 }
  0xe3   : > { %2957 = vst [vmem:[#allocation38_spill] sm:$0xff] %v1926_v42  ;;  %v1928_v43 = vld [vmem:[#allocation2 + $0x2] sm:$0xff]  ;;  %v319_v51 = vadd.f32 %v1841_v14, %v1926_v42  ;;  %v1950_v55 = vld [vmem:[#allocation2 + $0xa] sm:$0xff]  ;;  %306 = vst.msk [vmem:[#allocation2 + $0x51] sm:$0xff] %vm298_vm3, %v289_v45  ;;  %v368_v57 = vadd.f32 %v1852_v17, %v1954_v56  ;;  %v2015_v45 = vstv %s1835_s12  ;;  %s2029_s12 = sld [smem:[#allocation7 + $0x23]] }
  0xe4   : > { %2958 = vst [vmem:[#allocation39_spill] sm:$0xff] %v1928_v43  ;;  %v1930_v44 = vld [vmem:[#allocation2 + $0x8] sm:$0xff]  ;;  %v325_v53 = vadd.f32 %v1844_v15, %v1928_v43  ;;  %305 = vst.msk [vmem:[#allocation2 + $0x49] sm:$0xff] %vm298_vm3, %v287_v46  ;;  %v1960_v58 = vld [vmem:[#allocation2 + $0x1a] sm:$0xff]  ;;  %v326_v1 = vadd.f32 %v1844_v15, %v1950_v55  ;;  %v533_v6 = vadd.f32 %v1891_v32, %v1928_v43 }
  0xe5   : > { %v314_v54 = vadd.f32 %v1838_v13, %v1930_v44  ;;  %v1962_v59 = vld [vmem:[#allocation2 + $0x20] sm:$0xff]  ;;  %v374_v20 = vadd.f32 %v1855_v18, %v1960_v58  ;;  %2971 = vst [vmem:[#allocation49_spill] sm:$0xff] %v2012_v29  ;;  %2972 = vst [vmem:[#allocation50_spill] sm:$0xff] %v2015_v45  ;;  %v2060_v13 = vstv %s1942_s0  ;;  %v522_v62 = vadd.f32 %v1873_v26, %v1930_v44  ;;  %s1479_s0 = scalar_lea.vmem %s2760_s28, 1024 }
  0xe6   : > { %v1975_v63 = vmax.f32 %v320_v52, %v325_v53  ;;  %v363_v2 = vadd.f32 %v1849_v16, %v1962_v59  ;;  %v1981_v3 = vld [vmem:[#allocation2 + $0x22] sm:$0xff]  ;;  %v1985_v4 = vld [vmem:[#allocation2 + $0x30] sm:$0xff]  ;;  %v2031_v52 = vld [vmem:[#allocation2 + $0x39] sm:$0xff]  ;;  %v2057_v16 = vstv %s1924_s30  ;;  %2980 = vst [vmem:[#allocation58_spill] sm:$0xff] %v2060_v13  ;;  %v2094_v13 = vstv %s1983_s13  ;;  %s1131_s30 = scalar_lea.sflag [#allocation5], %s3069_s7  ;;  %p1480_p7 = scmp.ne.s32.totalorder %s2760_s28, %s1479_s0 }
  0xe7   : > { %v321_v0 = vmax.f32 %v314_v54, %v319_v51  ;;  %v1987_v5 = vld [vmem:[#allocation2 + $0x31] sm:$0xff]  ;;  %v375_v28 = vadd.f32 %v1855_v18, %v1981_v3  ;;  %v413_v47 = vadd.f32 %v1858_v19, %v1985_v4  ;;  %v2027_v51 = vstv %s1846_s15  ;;  %s2049_s15 = sld [smem:[#allocation7 + $0x2d]]  ;;  %2979 = vst [vmem:[#allocation57_spill] sm:$0xff] %v2057_v16  ;;  %2987 = vst [vmem:[#allocation65_spill] sm:$0xff] %v2094_v13 }
  0xe8   : > { %2965 = vst [vmem:[#allocation44_spill] sm:$0xff] %v1975_v63  ;;  %v331_v10 = vadd.f32 %v1975_v63, %v1841_v14  ;;  %v370_v21 = vmax.f32 %v363_v2, %v368_v57  ;;  %v418_v48 = vadd.f32 %v1867_v24, %v1987_v5  ;;  %2973 = vst [vmem:[#allocation51_spill] sm:$0xff] %v2027_v51  ;;  %v2033_v53 = vld [vmem:[#allocation2 + $0x32] sm:$0xff]  ;;  %v2041_v57 = vstv %s1878_s21  ;;  %p1481_p8 = pnand %p1480_p7, %p3075_p3 }
  0xe9   : > { %v2005_v11 = vmax.f32 %v321_v0, %v326_v1  ;;  %v2035_v54 = vld [vmem:[#allocation2 + $0x38] sm:$0xff]  ;;  %2975 = vst [vmem:[#allocation53_spill] sm:$0xff] %v2041_v57  ;;  %v2044_v0 = vstv %s1896_s29  ;;  %v2047_v1 = vstv %s1910_s6  ;;  %v343_v2 = vadd.f32 %v1975_v63, %v1844_v15  ;;  %s3074_s29 = sld [smem:[#allocation82_spill]] }
  0xea   : > { %335 = vrot.lane.b32.xlu0 %v331_v10, %s1576_s24  ;;  %2976 = vst [vmem:[#allocation54_spill] sm:$0xff] %v2044_v0  ;;  %2977 = vst [vmem:[#allocation55_spill] sm:$0xff] %v2047_v1  ;;  %v2054_v10 = vmax.f32 %v369_v12, %v374_v20  ;;  %v2074_v63 = vstv %s1973_s18  ;;  %v419_v12 = vadd.f32 %v1867_v24, %v2031_v52  ;;  %v2135_v43 = vstv %s2029_s12  ;;  %p1482_p9 = pneg %p1481_p8 }
  0xeb   : > { %2970 = vst [vmem:[#allocation48_spill] sm:$0xff] %v2005_v11  ;;  %v332_v46 = vadd.f32 %v2005_v11, %v1841_v14  ;;  %v2038_v14 = vstv %s1860_s19  ;;  %v344_v57 = vadd.f32 %v2005_v11, %v1844_v15  ;;  %v2066_v0 = vld [vmem:[#allocation2 + $0x48] sm:$0xff]  ;;  %2985 = vst [vmem:[#allocation63_spill] sm:$0xff] %v2074_v63  ;;  %v420_v20 = vmax.f32 %v413_v47, %v418_v48  ;;  %v2085_v11 = vld [vmem:[#allocation2 + $0x51] sm:$0xff]  ;;  %s2099_s19 = sld [smem:[#allocation7 + $0x2e]] }
  0xec   : > { %2974 = vst [vmem:[#allocation52_spill] sm:$0xff] %v2038_v14  ;;  %2978 = vst [vmem:[#allocation56_spill] sm:$0xff] %v2054_v10  ;;  %v2064_v14 = vmax.f32 %v370_v21, %v375_v28  ;;  %v2068_v9 = vld [vmem:[#allocation2 + $0x49] sm:$0xff]  ;;  %v425_v15 = vadd.f32 %v1870_v25, %v2033_v53  ;;  %v414_v21 = vadd.f32 %v1858_v19, %v2035_v54  ;;  %v2083_v28 = vld [vmem:[#allocation2 + $0x3a] sm:$0xff]  ;;  %v2097_v47 = vstv %s2001_s17 }
  0xed   : > { %337 = vrot.lane.b32.xlu1 %v332_v46, %s1576_s24  ;;  %2982 = vst [vmem:[#allocation60_spill] sm:$0xff] %v2066_v0  ;;  %2983 = vst [vmem:[#allocation61_spill] sm:$0xff] %v2068_v9  ;;  %v2071_v46 = vstv %s1956_s2  ;;  %v521_v63 = vadd.f32 %v1873_v26, %v1862_v22  ;;  %v380_v48 = vadd.f32 %v2054_v10, %v1852_v17  ;;  %v2116_v1 = vld [vmem:[#allocation2 + $0x4a] sm:$0xff]  ;;  %s1578_s2 = smov [#allocation10]  }
  0xee   : > { %2981 = vst [vmem:[#allocation59_spill] sm:$0xff] %v2064_v14  ;;  %2984 = vst [vmem:[#allocation62_spill] sm:$0xff] %v2071_v46  ;;  %347 = vrot.lane.b32.xlu0 %v343_v2, %s1577_s25  ;;  %v2087_v46 = vld [vmem:[#allocation2 + $0x50] sm:$0xff]  ;;  %v526_v2 = vadd.f32 %v1876_v27, %v1864_v23  ;;  %v464_v19 = vadd.f32 %v1899_v34, %v2066_v0  ;;  %v469_v16 = vadd.f32 %v1902_v35, %v2068_v9  ;;  %s1483_s14 = sshll.u32 %s1578_s2, 4  ;;  %s1484_s14 = int_to_ptr.vmem [resolvable:$false] %s1483_s14 }
  0xef   : > { %2986 = vst [vmem:[#allocation64_spill] sm:$0xff] %v2083_v28  ;;  %2988 = vst [vmem:[#allocation66_spill] sm:$0xff] %v2097_v47  ;;  %v527_v13 = vadd.f32 %v1876_v27, %v1926_v42  ;;  %v426_v47 = vadd.f32 %v1870_v25, %v2083_v28  ;;  %v2123_v61 = vmax.f32 %v420_v20, %v425_v15  ;;  %v2129_v0 = vld [vmem:[#allocation2 + $0x52] sm:$0xff]  ;;  %v2132_v28 = vstv %s2017_s3  ;;  %s2758_s6 = scalar_lea.hbm %s3074_s29, %s1329_s26  ;;  %s1485_s16 = scalar_lea.vmem %s1484_s14, 2048 }
  0xf0   : > { %v421_v9 = vmax.f32 %v414_v21, %v419_v12  ;;  %v470_v60 = vadd.f32 %v1902_v35, %v2085_v11  ;;  %v528_v51 = vmax.f32 %v521_v63, %v526_v2  ;;  %2990 = vst [vmem:[#allocation68_spill] sm:$0xff] %v2132_v28  ;;  %2991 = vst [vmem:[#allocation69_spill] sm:$0xff] %v2135_v43  ;;  %v2138_v42 = vstv %s2049_s15  ;;  %p1486_p12 = scmp.lt.s32.totalorder %s2760_s28, %s1484_s14  ;;  %p1487_p13 = scmp.lt.s32.totalorder %s1485_s16, %s1479_s0 }
  0xf1   : > { %349 = vrot.lane.b32.xlu1 %v344_v57, %s1577_s25  ;;  %v381_v57 = vadd.f32 %v2064_v14, %v1852_v17  ;;  %2989 = vst [vmem:[#allocation67_spill] sm:$0xff] %v2123_v61  ;;  %v465_v17 = vadd.f32 %v1899_v34, %v2087_v46  ;;  %2992 = vst [vmem:[#allocation70_spill] sm:$0xff] %v2138_v42  ;;  %v392_v12 = vadd.f32 %v2054_v10, %v1855_v18 }
  0xf2   : > { %384 = vrot.lane.b32.xlu0 %v380_v48, %s1576_s24  ;;  %v471_v20 = vmax.f32 %v464_v19, %v469_v16  ;;  %v476_v15 = vadd.f32 %v1905_v36, %v2116_v1  ;;  %v569_v21 = vadd.f32 %v1894_v33, %v1886_v30  ;;  %v393_v63 = vadd.f32 %v2064_v14, %v1855_v18  ;;  %p1488_p2 = por %p1487_p13, %p1486_p12 }
  0xf3   : > { %v2149_v2 = vmax.f32 %v528_v51, %v533_v6  ;;  %v529_v48 = vmax.f32 %v522_v62, %v527_v13  ;;  %v431_v16 = vadd.f32 %v2123_v61, %v1867_v24  ;;  %v2156_v19 = vmax.f32 %v421_v9, %v426_v47 }
  0xf4   : > { %v472_v26 = vmax.f32 %v465_v17, %v470_v60  ;;  %v477_v34 = vadd.f32 %v1905_v36, %v2129_v0  ;;  %v534_v18 = vadd.f32 %v1891_v32, %v1950_v55  ;;  %v575_v13 = vadd.f32 %v1908_v37, %v1954_v56  ;;  %v3005_v42 = vld [vmem:[#allocation60_spill] sm:$0xff]  ;;  %p1489_p4 = pnand %p1488_p2, %p1482_p9 }
  0xf5   : > { %386 = vrot.lane.b32.xlu1 %v381_v57, %s1576_s24  ;;  %2993 = vst [vmem:[#allocation71_spill] sm:$0xff] %v2149_v2  ;;  %v574_v57 = vadd.f32 %v1908_v37, %v1888_v31  ;;  %2994 = vst [vmem:[#allocation72_spill] sm:$0xff] %v2156_v19  ;;  %v570_v62 = vadd.f32 %v1894_v33, %v1962_v59  ;;  %v2167_v6 = vstv %s2099_s19  ;;  %v2181_v47 = vstv %s2110_s1 }
  0xf6   : > { %396 = vrot.lane.b32.xlu0 %v392_v12, %s1577_s25  ;;  %2995 = vst [vmem:[#allocation73_spill] sm:$0xff] %v2167_v6  ;;  %v2170_v51 = vmax.f32 %v471_v20, %v476_v15  ;;  %v2174_v60 = vadd.f32 %v1937_v49, %v1862_v22  ;;  %v2178_v9 = vadd.f32 %v1940_v50, %v1864_v23  ;;  %2997 = vst [vmem:[#allocation75_spill] sm:$0xff] %v2181_v47  ;;  %v3004_v6 = vld [vmem:[#allocation51_spill] sm:$0xff] }
  0xf7   : > { %v2183_v17 = vmax.f32 %v529_v48, %v534_v18  ;;  %v576_v12 = vmax.f32 %v569_v21, %v574_v57  ;;  %v2187_v33 = vadd.f32 %v1993_v7, %v1886_v30  ;;  %v2191_v20 = vadd.f32 %v1996_v8, %v1888_v31  ;;  %v3006_v31 = vld [vmem:[#allocation41_spill] sm:$0xff] }
  0xf8   : > { %2996 = vst [vmem:[#allocation74_spill] sm:$0xff] %v2170_v51  ;;  %v432_v15 = vadd.f32 %v2156_v19, %v1867_v24  ;;  %v2200_v48 = vadd.f32 %v2149_v2, %v1876_v27  ;;  %v581_v21 = vadd.f32 %v1913_v38, %v1960_v58  ;;  %v443_v57 = vadd.f32 %v2123_v61, %v1870_v25 }
  0xf9   : > { %398 = vrot.lane.b32.xlu1 %v393_v63, %s1577_s25  ;;  %2998 = vst [vmem:[#allocation76_spill] sm:$0xff] %v2183_v17  ;;  %v2196_v63 = vmax.f32 %v472_v26, %v477_v34  ;;  %v2208_v18 = vadd.f32 %v2149_v2, %v1891_v32  ;;  %v582_v24 = vadd.f32 %v1913_v38, %v1981_v3 }
  0xfa   : > { %435 = vrot.lane.b32.xlu0 %v431_v16, %s1576_s24  ;;  %v577_v16 = vmax.f32 %v570_v62, %v575_v13  ;;  %v444_v26 = vadd.f32 %v2156_v19, %v1870_v25  ;;  %v482_v34 = vadd.f32 %v2170_v51, %v1902_v35  ;;  %v619_v14 = vadd.f32 %v1916_v39, %v1985_v4 }
  0xfb   : > { %v624_v61 = vadd.f32 %v1919_v40, %v1987_v5  ;;  %v494_v13 = vadd.f32 %v2170_v51, %v1905_v36  ;;  %v2225_v62 = vadd.f32 %v2183_v17, %v1876_v27  ;;  %v620_v25 = vadd.f32 %v1916_v39, %v2035_v54  ;;  %v3001_v39 = vld [vmem:[#allocation38_spill] sm:$0xff] }
  0xfc   : > { %v483_v2 = vadd.f32 %v2196_v63, %v1902_v35  ;;  %v2236_v19 = vadd.f32 %v2183_v17, %v1891_v32  ;;  %v2238_v51 = vmax.f32 %v576_v12, %v581_v21  ;;  %v931_v27 = vadd.f32 %v2012_v29, %v1862_v22  ;;  %v3002_v17 = vld [vmem:[#allocation64_spill] sm:$0xff]  ;;  %v3003_v21 = vld [vmem:[#allocation39_spill] sm:$0xff] }
  0xfd   : > { %437 = vrot.lane.b32.xlu1 %v432_v15, %s1576_s24  ;;  %v625_v15 = vadd.f32 %v1919_v40, %v2031_v52  ;;  %v2242_v10 = vmax.f32 %v577_v16, %v582_v24  ;;  %v631_v47 = vadd.f32 %v1922_v41, %v2033_v53  ;;  %v937_v35 = vadd.f32 %v2015_v45, %v3001_v39 }
  0xfe   : > { %447 = vrot.lane.b32.xlu0 %v443_v57, %s1577_s25  ;;  %2999 = vst [vmem:[#allocation77_spill] sm:$0xff] %v2236_v19  ;;  %3000 = vst [vmem:[#allocation78_spill] sm:$0xff] %v2238_v51  ;;  %v936_v57 = vadd.f32 %v2015_v45, %v1864_v23  ;;  %v626_v32 = vmax.f32 %v619_v14, %v624_v61  ;;  %v632_v12 = vadd.f32 %v1922_v41, %v3002_v17  ;;  %v3007_v23 = vld [vmem:[#allocation61_spill] sm:$0xff]  ;;  %v3008_v19 = vld [vmem:[#allocation42_spill] sm:$0xff] }
  0xff   : > { %v943_v22 = vadd.f32 %v3004_v6, %v3003_v21  ;;  %v932_v16 = vadd.f32 %v2012_v29, %v1930_v44  ;;  %v627_v24 = vmax.f32 %v620_v25, %v625_v15  ;;  %v669_v30 = vadd.f32 %v3006_v31, %v3005_v42 }
 0x100   : > { %v674_v43 = vadd.f32 %v3008_v19, %v3007_v23  ;;  %v938_v45 = vmax.f32 %v931_v27, %v936_v57  ;;  %v495_v61 = vadd.f32 %v2196_v63, %v1905_v36  ;;  %v2266_v14 = vadd.f32 %v2238_v51, %v1908_v37 }
 0x101   : > { %449 = vrot.lane.b32.xlu1 %v444_v26, %s1577_s25  ;;  %v939_v26 = vmax.f32 %v932_v16, %v937_v35  ;;  %v944_v15 = vadd.f32 %v3004_v6, %v1950_v55  ;;  %v2272_v25 = vadd.f32 %v2242_v10, %v1908_v37  ;;  %v2276_v27 = vadd.f32 %v2238_v51, %v1913_v38  ;;  %v3009_v37 = vld [vmem:[#allocation43_spill] sm:$0xff] }
 0x102   : > { %486 = vrot.lane.b32.xlu0 %v482_v34, %s1576_s24  ;;  %v675_v34 = vadd.f32 %v3008_v19, %v2085_v11  ;;  %v2280_v36 = vmax.f32 %v938_v45, %v943_v22  ;;  %v2285_v57 = vadd.f32 %v2242_v10, %v1913_v38  ;;  %v2287_v35 = vmax.f32 %v626_v32, %v631_v47  ;;  %v3010_v38 = vld [vmem:[#allocation45_spill] sm:$0xff] }
 0x103   : > { %v681_v16 = vadd.f32 %v3009_v37, %v2116_v1  ;;  %v2291_v6 = vmax.f32 %v939_v26, %v944_v15  ;;  %v2293_v29 = vmax.f32 %v627_v24, %v632_v12  ;;  %v676_v51 = vmax.f32 %v669_v30, %v674_v43  ;;  %v3011_v12 = vld [vmem:[#allocation55_spill] sm:$0xff]  ;;  %v3012_v43 = vld [vmem:[#allocation57_spill] sm:$0xff] }
 0x104   : > { %v2297_v45 = vadd.f32 %v1940_v50, %v3001_v39  ;;  %v2304_v47 = vadd.f32 %v3010_v38, %v3003_v21  ;;  %v2308_v32 = vadd.f32 %v1937_v49, %v1930_v44  ;;  %v824_v30 = vadd.f32 %v3011_v12, %v1985_v4  ;;  %v3013_v21 = vld [vmem:[#allocation58_spill] sm:$0xff] }
 0x105   : > { %488 = vrot.lane.b32.xlu1 %v483_v2, %s1576_s24  ;;  %v829_v39 = vadd.f32 %v3012_v43, %v1987_v5  ;;  %v2316_v22 = vadd.f32 %v3010_v38, %v1950_v55  ;;  %v836_v24 = vadd.f32 %v3013_v21, %v2033_v53  ;;  %v825_v44 = vadd.f32 %v3011_v12, %v2035_v54 }
 0x106   : > { %498 = vrot.lane.b32.xlu0 %v494_v13, %s1577_s25  ;;  %v830_v13 = vadd.f32 %v3012_v43, %v2031_v52  ;;  %v2327_v26 = vadd.f32 %v2287_v35, %v1919_v40  ;;  %v2331_v15 = vadd.f32 %v2287_v35, %v1922_v41  ;;  %v837_v2 = vadd.f32 %v3013_v21, %v3002_v17  ;;  %v3014_v21 = vld [vmem:[#allocation62_spill] sm:$0xff] }
 0x107   : > { %v831_v55 = vmax.f32 %v824_v30, %v829_v39  ;;  %v2337_v43 = vadd.f32 %v2293_v29, %v1919_v40  ;;  %v2339_v38 = vmax.f32 %v676_v51, %v681_v16  ;;  %v1029_v19 = vadd.f32 %v3014_v21, %v1985_v4  ;;  %v3015_v40 = vld [vmem:[#allocation63_spill] sm:$0xff] }
 0x108   : > { %v832_v50 = vmax.f32 %v825_v44, %v830_v13  ;;  %v1034_v51 = vadd.f32 %v3015_v40, %v1987_v5  ;;  %v3016_v13 = vld [vmem:[#allocation65_spill] sm:$0xff]  ;;  %v775_v4 = vadd.f32 %v1993_v7, %v1962_v59  ;;  %v670_v5 = vadd.f32 %v3006_v31, %v2087_v46 }
 0x109   : > { %500 = vrot.lane.b32.xlu1 %v495_v61, %s1577_s25  ;;  %v2343_v61 = vadd.f32 %v1996_v8, %v1954_v56  ;;  %v2349_v39 = vmax.f32 %v831_v55, %v836_v24  ;;  %v1035_v8 = vadd.f32 %v3015_v40, %v2031_v52  ;;  %v1041_v44 = vadd.f32 %v3016_v13, %v2033_v53  ;;  %v3017_v53 = vld [vmem:[#allocation47_spill] sm:$0xff] }
 0x10a   : > { %543 = vrot.lane.b32.xlu0 %v2200_v48, %s1576_s24  ;;  %v2355_v16 = vmax.f32 %v832_v50, %v837_v2  ;;  %v1030_v48 = vadd.f32 %v3014_v21, %v2035_v54  ;;  %v1036_v24 = vmax.f32 %v1029_v19, %v1034_v51  ;;  %v1042_v50 = vadd.f32 %v3016_v13, %v3002_v17  ;;  %v3019_v51 = vld [vmem:[#allocation66_spill] sm:$0xff]  ;;  %v3022_v13 = vld [vmem:[#allocation77_spill] sm:$0xff] }
 0x10b   : > { %v781_v52 = vmax.f32 %v2187_v33, %v2191_v20  ;;  %v786_v2 = vadd.f32 %v3017_v53, %v1960_v58  ;;  %v787_v19 = vadd.f32 %v3017_v53, %v1981_v3  ;;  %v677_v55 = vmax.f32 %v670_v5, %v675_v34  ;;  %v3023_v5 = vld [vmem:[#allocation33_spill] sm:$0xff] }
 0x10c   : > { %v1037_v54 = vmax.f32 %v1030_v48, %v1035_v8  ;;  %v2381_v17 = vmax.f32 %v1036_v24, %v1041_v44  ;;  %v874_v30 = vadd.f32 %v3019_v51, %v3005_v42  ;;  %v879_v8 = vadd.f32 %v2132_v28, %v3007_v23  ;;  %v3021_v48 = vld [vmem:[#allocation69_spill] sm:$0xff] }
 0x10d   : > { %545 = vrot.lane.b32.xlu1 %v2225_v62, %s1576_s24  ;;  %v682_v62 = vadd.f32 %v3009_v37, %v2129_v0  ;;  %v880_v20 = vadd.f32 %v2132_v28, %v2085_v11  ;;  %v782_v44 = vmax.f32 %v775_v4, %v2343_v61  ;;  %v875_v24 = vadd.f32 %v3019_v51, %v2087_v46  ;;  %v3025_v28 = vld [vmem:[#allocation34_spill] sm:$0xff]  ;;  %v3026_v53 = vld [vmem:[#allocation53_spill] sm:$0xff] }
 0x10e   : > { %555 = vrot.lane.b32.xlu0 %v2208_v18, %s1577_s25  ;;  %3018 = vst [vmem:[#allocation38_spill] sm:$0xff] %v2381_v17  ;;  %v2385_v33 = vmax.f32 %v1037_v54, %v1042_v50  ;;  %v886_v18 = vadd.f32 %v3021_v48, %v2116_v1  ;;  %v887_v50 = vadd.f32 %v3021_v48, %v2129_v0  ;;  %v3024_v54 = vld [vmem:[#allocation52_spill] sm:$0xff]  ;;  %v3028_v48 = vld [vmem:[#allocation73_spill] sm:$0xff] }
 0x10f   : > { %v2396_v34 = vmax.f32 %v677_v55, %v682_v62  ;;  %v979_v40 = vadd.f32 %v3024_v54, %v3023_v5  ;;  %v985_v17 = vadd.f32 %v3026_v53, %v1954_v56  ;;  %v980_v61 = vadd.f32 %v3024_v54, %v1962_v59  ;;  %v3027_v62 = vld [vmem:[#allocation70_spill] sm:$0xff]  ;;  %v3029_v56 = vld [vmem:[#allocation75_spill] sm:$0xff] }
 0x110   : > { %3020 = vst [vmem:[#allocation64_spill] sm:$0xff] %v2385_v33  ;;  %v984_v33 = vadd.f32 %v3026_v53, %v3025_v28  ;;  %v882_v4 = vmax.f32 %v875_v24, %v880_v20  ;;  %v1079_v55 = vadd.f32 %v3027_v62, %v3005_v42  ;;  %v1084_v5 = vadd.f32 %v3028_v48, %v3007_v23  ;;  %v3031_v20 = vld [vmem:[#allocation44_spill] sm:$0xff]  ;;  %v3032_v24 = vld [vmem:[#allocation54_spill] sm:$0xff] }
 0x111   : > { %557 = vrot.lane.b32.xlu1 %v3022_v13, %s1577_s25  ;;  %v881_v13 = vmax.f32 %v874_v30, %v879_v8  ;;  %v1085_v28 = vadd.f32 %v3028_v48, %v2085_v11  ;;  %v1091_v30 = vadd.f32 %v3029_v56, %v2116_v1  ;;  %v1092_v23 = vadd.f32 %v3029_v56, %v2129_v0  ;;  %v3030_v8 = vld [vmem:[#allocation29_spill] sm:$0xff] }
 0x112   : > { %591 = vrot.lane.b32.xlu0 %v2266_v14, %s1576_s24  ;;  %v1080_v14 = vadd.f32 %v3027_v62, %v2087_v46  ;;  %v2426_v59 = vmax.f32 %v882_v4, %v887_v50  ;;  %v1086_v42 = vmax.f32 %v1079_v55, %v1084_v5  ;;  %v986_v11 = vmax.f32 %v979_v40, %v984_v33  ;;  %v3033_v46 = vld [vmem:[#allocation48_spill] sm:$0xff]  ;;  %v3035_v55 = vld [vmem:[#allocation30_spill] sm:$0xff] }
 0x113   : > { %v2416_v51 = vmax.f32 %v881_v13, %v886_v18  ;;  %v2432_v18 = vadd.f32 %v3031_v20, %v3030_v8  ;;  %v991_v1 = vadd.f32 %v3032_v24, %v1960_v58  ;;  %v2438_v48 = vadd.f32 %v3033_v46, %v3030_v8  ;;  %v3036_v5 = vld [vmem:[#allocation56_spill] sm:$0xff]  ;;  %v3048_v46 = vld [vmem:[#allocation78_spill] sm:$0xff] }
 0x114   : > { %v1087_v13 = vmax.f32 %v1080_v14, %v1085_v28  ;;  %v992_v0 = vadd.f32 %v3032_v24, %v1981_v3  ;;  %v2444_v50 = vmax.f32 %v1086_v42, %v1091_v30  ;;  %v2448_v40 = vadd.f32 %v2396_v34, %v3009_v37  ;;  %v3041_v14 = vld [vmem:[#allocation72_spill] sm:$0xff] }
 0x115   : > { %593 = vrot.lane.b32.xlu1 %v2272_v25, %s1576_s24  ;;  %v987_v25 = vmax.f32 %v980_v61, %v985_v17  ;;  %v3034_v58 = vmax.f32 %v2174_v60, %v2178_v9  ;;  %v3037_v17 = vld [vmem:[#allocation59_spill] sm:$0xff]  ;;  %v3038_v61 = vmax.f32 %v2308_v32, %v2297_v45  ;;  %v788_v60 = vmax.f32 %v781_v52, %v786_v2  ;;  %v3042_v20 = vld [vmem:[#allocation36_spill] sm:$0xff] }
 0x116   : > { %603 = vrot.lane.b32.xlu0 %v2276_v27, %s1577_s25  ;;  %v2454_v4 = vmax.f32 %v1087_v13, %v1092_v23  ;;  %v2458_v27 = vadd.f32 %v3036_v5, %v3035_v55  ;;  %v2462_v3 = vadd.f32 %v3037_v17, %v3035_v55  ;;  %v3039_v9 = vld [vmem:[#allocation31_spill] sm:$0xff]  ;;  %v789_v23 = vmax.f32 %v782_v44, %v787_v19  ;;  %v3043_v13 = vld [vmem:[#allocation74_spill] sm:$0xff]  ;;  %v3044_v52 = vld [vmem:[#allocation32_spill] sm:$0xff] }
 0x117   : > { %v740_v33 = vmax.f32 %v3034_v58, %v2304_v47  ;;  %v741_v28 = vmax.f32 %v3038_v61, %v2316_v22  ;;  %v3040_v47 = vld [vmem:[#allocation67_spill] sm:$0xff]  ;;  %v2476_v42 = vadd.f32 %v3041_v14, %v3039_v9  ;;  %v2478_v8 = vmax.f32 %v986_v11, %v991_v1  ;;  %v3046_v44 = vld [vmem:[#allocation76_spill] sm:$0xff]  ;;  %v3049_v58 = vld [vmem:[#allocation37_spill] sm:$0xff] }
 0x118   : > { %v2472_v30 = vadd.f32 %v3040_v47, %v3039_v9  ;;  %v2486_v45 = vadd.f32 %v2196_v63, %v3042_v20  ;;  %v650_v32 = vadd.f32 %v2293_v29, %v1922_v41  ;;  %v2492_v22 = vmax.f32 %v987_v25, %v992_v0  ;;  %v3045_v2 = vld [vmem:[#allocation71_spill] sm:$0xff]  ;;  %v3051_v47 = vld [vmem:[#allocation38_spill] sm:$0xff] }
 0x119   : > { %605 = vrot.lane.b32.xlu1 %v2285_v57, %s1577_s25  ;;  %v2482_v57 = vadd.f32 %v3043_v13, %v3042_v20  ;;  %v2496_v19 = vadd.f32 %v3045_v2, %v3044_v52  ;;  %v2500_v11 = vadd.f32 %v3046_v44, %v3044_v52  ;;  %v3047_v1 = vld [vmem:[#allocation35_spill] sm:$0xff]  ;;  %v2512_v41 = vadd.f32 %v2287_v35, %v3049_v58  ;;  %v3052_v20 = vld [vmem:[#allocation64_spill] sm:$0xff]  ;;  %v3054_v2 = vld [vmem:[#allocation42_spill] sm:$0xff] }
 0x11a   : > { %641 = vrot.lane.b32.xlu0 %v2327_v26, %s1576_s24  ;;  %v2504_v63 = vadd.f32 %v3048_v46, %v3047_v1  ;;  %v2508_v26 = vadd.f32 %v2242_v10, %v3047_v1  ;;  %v2516_v25 = vadd.f32 %v2293_v29, %v3049_v58  ;;  %v2522_v0 = vadd.f32 %v2339_v38, %v3006_v31  ;;  %v3050_v29 = vld [vmem:[#allocation49_spill] sm:$0xff]  ;;  %v3056_v1 = vld [vmem:[#allocation40_spill] sm:$0xff] }
 0x11b   : > { %v2525_v55 = vadd.f32 %v740_v33, %v1937_v49  ;;  %v2528_v10 = vadd.f32 %v741_v28, %v1937_v49  ;;  %v2531_v35 = vadd.f32 %v788_v60, %v1993_v7  ;;  %v2534_v5 = vadd.f32 %v789_v23, %v1993_v7 }
 0x11c   : > { %v2538_v17 = vadd.f32 %v2280_v36, %v3050_v29  ;;  %v2546_v61 = vadd.f32 %v2478_v8, %v3024_v54  ;;  %v2552_v49 = vadd.f32 %v2492_v22, %v3024_v54  ;;  %v2556_v7 = vadd.f32 %v2349_v39, %v3011_v12  ;;  %v3053_v54 = vld [vmem:[#allocation66_spill] sm:$0xff] }
 0x11d   : > { %643 = vrot.lane.b32.xlu1 %v2337_v43, %s1576_s24  ;;  %v2542_v43 = vadd.f32 %v2291_v6, %v3050_v29  ;;  %v2560_v9 = vadd.f32 %v2355_v16, %v3011_v12  ;;  %v2564_v14 = vadd.f32 %v3051_v47, %v3014_v21  ;;  %v2568_v13 = vadd.f32 %v3052_v20, %v3014_v21 }
 0x11e   : > { %653 = vrot.lane.b32.xlu0 %v2331_v15, %s1577_s25  ;;  %v2572_v15 = vadd.f32 %v2396_v34, %v3006_v31  ;;  %v2576_v52 = vadd.f32 %v2416_v51, %v3053_v54  ;;  %v2580_v12 = vadd.f32 %v2426_v59, %v3053_v54  ;;  %v687_v44 = vadd.f32 %v2339_v38, %v3054_v2 }
 0x11f   : > { %v2587_v21 = vadd.f32 %v2444_v50, %v3027_v62  ;;  %v2591_v31 = vadd.f32 %v2454_v4, %v3027_v62  ;;  %v744_v46 = vadd.f32 %v740_v33, %v3056_v1  ;;  %v745_v58 = vadd.f32 %v741_v28, %v3056_v1  ;;  %v3058_v62 = vld [vmem:[#allocation50_spill] sm:$0xff] }
 0x120   : > { %v997_v1 = vadd.f32 %v2478_v8, %v3026_v53 }
 0x121   : > { %655 = vrot.lane.b32.xlu1 %v650_v32, %s1577_s25  ;;  %3055 = vst [vmem:[#allocation39_spill] sm:$0xff] %v2591_v31  ;;  %v3057_v32 = vld [vmem:[#allocation46_spill] sm:$0xff]  ;;  %v949_v31 = vadd.f32 %v2280_v36, %v3058_v62 }
 0x122   : > { %691 = vrot.lane.b32.xlu0 %v687_v44, %s1576_s24  ;;  %v792_v29 = vadd.f32 %v788_v60, %v3057_v32  ;;  %v793_v54 = vadd.f32 %v789_v23, %v3057_v32  ;;  %v950_v44 = vadd.f32 %v2291_v6, %v3058_v62 }
 0x125   : > { %748 = vrot.lane.b32.xlu1 %v744_v46, %s1576_s24  ;;  %v998_v46 = vadd.f32 %v2492_v22, %v3026_v53 }
 0x126   : > { %750 = vrot.lane.b32.xlu0 %v745_v58, %s1576_s24  ;;  %v3059_v58 = vld [vmem:[#allocation45_spill] sm:$0xff] }
 0x127   : > { %v756_v32 = vadd.f32 %v740_v33, %v3059_v58 }
 0x129   : > { %796 = vrot.lane.b32.xlu1 %v792_v29, %s1576_s24  ;;  %v3060_v29 = vld [vmem:[#allocation47_spill] sm:$0xff] }
 0x12a   : > { %798 = vrot.lane.b32.xlu0 %v793_v54, %s1576_s24  ;;  %v804_v54 = vadd.f32 %v788_v60, %v3060_v29  ;;  %v805_v62 = vadd.f32 %v789_v23, %v3060_v29  ;;  %v1009_v23 = vadd.f32 %v2478_v8, %v3032_v24  ;;  %v688_v8 = vadd.f32 %v2396_v34, %v3054_v2  ;;  %v3066_v2 = vld [vmem:[#allocation65_spill] sm:$0xff] }
 0x12d   : > { %953 = vrot.lane.b32.xlu1 %v949_v31, %s1576_s24  ;;  %v757_v31 = vadd.f32 %v741_v28, %v3059_v58  ;;  %v3062_v28 = vld [vmem:[#allocation51_spill] sm:$0xff] }
 0x12e   : > { %955 = vrot.lane.b32.xlu0 %v950_v44, %s1576_s24  ;;  %v3061_v44 = vld [vmem:[#allocation57_spill] sm:$0xff]  ;;  %v962_v60 = vadd.f32 %v2291_v6, %v3062_v28  ;;  %v3063_v58 = vld [vmem:[#allocation63_spill] sm:$0xff] }
 0x12f   : > { %v842_v53 = vadd.f32 %v2349_v39, %v3061_v44  ;;  %v843_v33 = vadd.f32 %v2355_v16, %v3061_v44  ;;  %v1048_v6 = vadd.f32 %v3052_v20, %v3063_v58 }
 0x131   : > { %1001 = vrot.lane.b32.xlu1 %v997_v1, %s1576_s24  ;;  %v961_v1 = vadd.f32 %v2280_v36, %v3062_v28  ;;  %v1047_v36 = vadd.f32 %v3051_v47, %v3063_v58  ;;  %v3068_v28 = vld [vmem:[#allocation69_spill] sm:$0xff] }
 0x132   : > { %1003 = vrot.lane.b32.xlu0 %v998_v46, %s1576_s24  ;;  %v1010_v46 = vadd.f32 %v2492_v22, %v3032_v24 }
 0x135   : > { %760 = vrot.lane.b32.xlu1 %v756_v32, %s1577_s25  ;;  %v3064_v32 = vld [vmem:[#allocation58_spill] sm:$0xff] }
 0x136   : > { %762 = vrot.lane.b32.xlu0 %v757_v31, %s1577_s25  ;;  %v854_v24 = vadd.f32 %v2349_v39, %v3064_v32  ;;  %v855_v22 = vadd.f32 %v2355_v16, %v3064_v32  ;;  %v3065_v31 = vld [vmem:[#allocation68_spill] sm:$0xff]  ;;  %v1059_v39 = vadd.f32 %v3051_v47, %v3066_v2  ;;  %v1060_v16 = vadd.f32 %v3052_v20, %v3066_v2 }
 0x137   : > { %v892_v29 = vadd.f32 %v2416_v51, %v3065_v31  ;;  %v893_v34 = vadd.f32 %v2426_v59, %v3065_v31  ;;  %v699_v47 = vadd.f32 %v2339_v38, %v3009_v37  ;;  %v1109_v37 = vadd.f32 %v2444_v50, %v3029_v56 }
 0x139   : > { %808 = vrot.lane.b32.xlu1 %v804_v54, %s1577_s25  ;;  %v3067_v54 = vld [vmem:[#allocation73_spill] sm:$0xff] }
 0x13a   : > { %810 = vrot.lane.b32.xlu0 %v805_v62, %s1577_s25  ;;  %v1097_v62 = vadd.f32 %v2444_v50, %v3067_v54  ;;  %v1098_v44 = vadd.f32 %v2454_v4, %v3067_v54 }
 0x13d   : > { %846 = vrot.lane.b32.xlu1 %v842_v53, %s1576_s24 }
 0x13e   : > { %848 = vrot.lane.b32.xlu0 %v843_v33, %s1576_s24 }
 0x141   : > { %965 = vrot.lane.b32.xlu1 %v961_v1, %s1577_s25  ;;  %v904_v1 = vadd.f32 %v2416_v51, %v3068_v28 }
 0x142   : > { %967 = vrot.lane.b32.xlu0 %v962_v60, %s1577_s25 }
 0x145   : > { %1013 = vrot.lane.b32.xlu1 %v1009_v23, %s1577_s25  ;;  %v905_v23 = vadd.f32 %v2426_v59, %v3068_v28 }
 0x146   : > { %1015 = vrot.lane.b32.xlu0 %v1010_v46, %s1577_s25 }
 0x149   : > { %1051 = vrot.lane.b32.xlu1 %v1047_v36, %s1576_s24 }
 0x14a   : > { %1053 = vrot.lane.b32.xlu0 %v1048_v6, %s1576_s24 }
 0x14d   : > { %693 = vrot.lane.b32.xlu1 %v688_v8, %s1576_s24 }
 0x14e   : > { %858 = vrot.lane.b32.xlu0 %v854_v24, %s1577_s25 }
 0x151   : > { %860 = vrot.lane.b32.xlu1 %v855_v22, %s1577_s25 }
 0x152   : > { %896 = vrot.lane.b32.xlu0 %v892_v29, %s1576_s24 }
 0x155   : > { %898 = vrot.lane.b32.xlu1 %v893_v34, %s1576_s24 }
 0x156   : > { %1063 = vrot.lane.b32.xlu0 %v1059_v39, %s1577_s25 }
 0x159   : > { %1065 = vrot.lane.b32.xlu1 %v1060_v16, %s1577_s25 }
 0x15a   : > { %1101 = vrot.lane.b32.xlu0 %v1097_v62, %s1576_s24 }
 0x15c   : > { %v336_v53 = vpop.permute.xlu0 %335 }
 0x15d   : > { %1103 = vrot.lane.b32.xlu1 %v1098_v44, %s1576_s24  ;;  %v341_v51 = vmax.f32 %v2432_v18, %v336_v53 }
 0x15e   : > { %703 = vrot.lane.b32.xlu0 %v699_v47, %s1577_s25 }
 0x15f   : > { %v338_v33 = vpop.permute.xlu1 %337 }
 0x160   : > { %v348_v20 = vpop.permute.xlu0 %347  ;;  %v342_v59 = vmax.f32 %v2438_v48, %v338_v33 }
 0x161   : > { %705 = vrot.lane.b32.xlu1 %v2448_v40, %s1577_s25  ;;  %v1110_v40 = vadd.f32 %v2454_v4, %v3029_v56  ;;  %v353_v6 = vmax.f32 %v341_v51, %v348_v20  ;;  %v509_v20 = vstv %s508_s4 }
 0x162   : > { %908 = vrot.lane.b32.xlu0 %v904_v1, %s1577_s25 }
 0x163   : > { %v350_v60 = vpop.permute.xlu1 %349 }
 0x164   : > { %v385_v46 = vpop.permute.xlu0 %384  ;;  %v354_v24 = vmax.f32 %v342_v59, %v350_v60 }
 0x165   : > { %910 = vrot.lane.b32.xlu1 %v905_v23, %s1577_s25  ;;  %v390_v58 = vmax.f32 %v2458_v27, %v385_v46 }
 0x166   : > { %1113 = vrot.lane.b32.xlu0 %v1109_v37, %s1577_s25 }
 0x167   : > { %v387_v38 = vpop.permute.xlu1 %386 }
 0x168   : > { %v397_v36 = vpop.permute.xlu0 %396  ;;  %v391_v8 = vmax.f32 %v2462_v3, %v387_v38 }
 0x169   : > { %1115 = vrot.lane.b32.xlu1 %v1110_v40, %s1577_s25  ;;  %v402_v32 = vmax.f32 %v390_v58, %v397_v36 }
 0x16b   : > { %v399_v50 = vpop.permute.xlu1 %398  ;;  %v404_v22 = vadd.f32 %v402_v32, %v353_v6 }
 0x16c   : > { %v403_v31 = vmax.f32 %v391_v8, %v399_v50  ;;  %v436_v29 = vpop.permute.xlu0 %435 }
 0x16d   : > { %v441_v18 = vmax.f32 %v2472_v30, %v436_v29 }
 0x16e   : > { %v405_v34 = vadd.f32 %v403_v31, %v354_v24 }
 0x16f   : > { %v438_v56 = vpop.permute.xlu1 %437 }
 0x170   : > { %v448_v4 = vpop.permute.xlu0 %447  ;;  %v442_v27 = vmax.f32 %v2476_v42, %v438_v56 }
 0x171   : > { %v453_v2 = vmax.f32 %v441_v18, %v448_v4 }
 0x173   : > { %v450_v39 = vpop.permute.xlu1 %449  ;;  %v455_v48 = vadd.f32 %v453_v2, %v404_v22 }
 0x174   : > { %v454_v16 = vmax.f32 %v442_v27, %v450_v39  ;;  %v487_v54 = vpop.permute.xlu0 %486 }
 0x175   : > { %v492_v44 = vmax.f32 %v2482_v57, %v487_v54 }
 0x176   : > { %v456_v3 = vadd.f32 %v454_v16, %v405_v34 }
 0x177   : > { %v489_v62 = vpop.permute.xlu1 %488 }
 0x178   : > { %v499_v53 = vpop.permute.xlu0 %498  ;;  %v493_v47 = vmax.f32 %v2486_v45, %v489_v62 }
 0x179   : > { %v504_v33 = vmax.f32 %v492_v44, %v499_v53 }
 0x17b   : > { %v501_v30 = vpop.permute.xlu1 %500  ;;  %v506_v28 = vadd.f32 %v504_v33, %v455_v48 }
 0x17c   : > { %v505_v1 = vmax.f32 %v493_v47, %v501_v30  ;;  %v544_v42 = vpop.permute.xlu0 %543 }
 0x17d   : > { %v510_v60 = vadd.f32 %v509_v20, %v506_v28  ;;  %v549_v46 = vmax.f32 %v2496_v19, %v544_v42 }
 0x17e   : > { %v507_v23 = vadd.f32 %v505_v1, %v456_v3 }
 0x17f   : > { %v546_v37 = vpop.permute.xlu1 %545  ;;  %513 = vst.msk [vmem:[%s2701_s5] sm:$0xff] %vm512_vm4, %v510_v60 }
 0x180   : > { %v511_v57 = vadd.f32 %v509_v20, %v507_v23  ;;  %v550_v45 = vmax.f32 %v2500_v11, %v546_v37  ;;  %v556_v38 = vpop.permute.xlu0 %555 }
 0x181   : > { %v561_v40 = vmax.f32 %v549_v46, %v556_v38 }
 0x182   : > { %514 = vst.msk [vmem:[%s2701_s5 + $0x8] sm:$0xff] %vm512_vm4, %v511_v57 }
 0x183   : > { %v558_v51 = vpop.permute.xlu1 %557 }
 0x184   : > { %v562_v58 = vmax.f32 %v550_v45, %v558_v51  ;;  %v592_v36 = vpop.permute.xlu0 %591 }
 0x185   : > { %v597_v19 = vmax.f32 %v2504_v63, %v592_v36 }
 0x187   : > { %v594_v59 = vpop.permute.xlu1 %593 }
 0x188   : > { %v598_v6 = vmax.f32 %v2508_v26, %v594_v59  ;;  %v604_v8 = vpop.permute.xlu0 %603 }
 0x189   : > { %v609_v32 = vmax.f32 %v597_v19, %v604_v8 }
 0x18b   : > { %v606_v50 = vpop.permute.xlu1 %605  ;;  %v611_v24 = vadd.f32 %v609_v32, %v561_v40 }
 0x18c   : > { %v610_v22 = vmax.f32 %v598_v6, %v606_v50  ;;  %v642_v31 = vpop.permute.xlu0 %641 }
 0x18d   : > { %v647_v11 = vmax.f32 %v2512_v41, %v642_v31 }
 0x18e   : > { %v612_v29 = vadd.f32 %v610_v22, %v562_v58 }
 0x18f   : > { %v644_v34 = vpop.permute.xlu1 %643 }
 0x190   : > { %v648_v56 = vmax.f32 %v2516_v25, %v644_v34  ;;  %v654_v18 = vpop.permute.xlu0 %653 }
 0x191   : > { %v659_v4 = vmax.f32 %v647_v11, %v654_v18 }
 0x193   : > { %v656_v27 = vpop.permute.xlu1 %655  ;;  %v2712_v2 = vadd.f32 %v659_v4, %v611_v24 }
 0x194   : > { %v660_v63 = vmax.f32 %v648_v56, %v656_v27  ;;  %v2714_v39 = vpop.permute.xlu0 %691 }
 0x196   : > { %v2716_v26 = vadd.f32 %v660_v63, %v612_v29 }
 0x197   : > { %v749_v48 = vpop.permute.xlu1 %748 }
 0x198   : > { %v751_v16 = vpop.permute.xlu0 %750  ;;  %v754_v33 = vmax.f32 %v2525_v55, %v749_v48 }
 0x199   : > { %v755_v28 = vmax.f32 %v2528_v10, %v751_v16 }
 0x19b   : > { %v797_v54 = vpop.permute.xlu1 %796 }
 0x19c   : > { %v799_v3 = vpop.permute.xlu0 %798  ;;  %v802_v20 = vmax.f32 %v2531_v35, %v797_v54 }
 0x19d   : > { %v803_v1 = vmax.f32 %v2534_v5, %v799_v3 }
 0x19f   : > { %v954_v62 = vpop.permute.xlu1 %953 }
 0x1a0   : > { %v956_v44 = vpop.permute.xlu0 %955  ;;  %v959_v55 = vmax.f32 %v2538_v17, %v954_v62 }
 0x1a1   : > { %v960_v10 = vmax.f32 %v2542_v43, %v956_v44 }
 0x1a3   : > { %v1002_v41 = vpop.permute.xlu1 %1001 }
 0x1a4   : > { %v1004_v53 = vpop.permute.xlu0 %1003  ;;  %v1007_v35 = vmax.f32 %v2546_v61, %v1002_v41 }
 0x1a5   : > { %v1008_v5 = vmax.f32 %v2552_v49, %v1004_v53  ;;  %v697_v53 = vmax.f32 %v2522_v0, %v2714_v39  ;;  %v919_v39 = vstv %s2730_s11 }
 0x1a7   : > { %v761_v47 = vpop.permute.xlu1 %760 }
 0x1a8   : > { %v763_v25 = vpop.permute.xlu0 %762  ;;  %v766_v42 = vmax.f32 %v754_v33, %v761_v47 }
 0x1a9   : > { %v767_v46 = vmax.f32 %v755_v28, %v763_v25 }
 0x1ab   : > { %v809_v30 = vpop.permute.xlu1 %808 }
 0x1ac   : > { %v814_v60 = vmax.f32 %v802_v20, %v809_v30  ;;  %v811_v23 = vpop.permute.xlu0 %810 }
 0x1ad   : > { %v815_v57 = vmax.f32 %v803_v1, %v811_v23 }
 0x1ae   : > { %v816_v37 = vadd.f32 %v814_v60, %v766_v42 }
 0x1af   : > { %v847_v45 = vpop.permute.xlu1 %846  ;;  %v817_v38 = vadd.f32 %v815_v57, %v767_v46 }
 0x1b0   : > { %v849_v40 = vpop.permute.xlu0 %848  ;;  %v852_v11 = vmax.f32 %v2556_v7, %v847_v45 }
 0x1b1   : > { %v853_v61 = vmax.f32 %v2560_v9, %v849_v40 }
 0x1b3   : > { %v966_v51 = vpop.permute.xlu1 %965 }
 0x1b4   : > { %v968_v58 = vpop.permute.xlu0 %967  ;;  %v971_v19 = vmax.f32 %v959_v55, %v966_v51  ;;  %v1124_v51 = vstv %s2735_s27 }
 0x1b5   : > { %v972_v8 = vmax.f32 %v960_v10, %v968_v58 }
 0x1b7   : > { %v1014_v36 = vpop.permute.xlu1 %1013 }
 0x1b8   : > { %v1019_v59 = vmax.f32 %v1007_v35, %v1014_v36  ;;  %v1016_v6 = vpop.permute.xlu0 %1015 }
 0x1b9   : > { %v1020_v50 = vmax.f32 %v1008_v5, %v1016_v6 }
 0x1ba   : > { %v1021_v32 = vadd.f32 %v1019_v59, %v971_v19 }
 0x1bb   : > { %v1052_v24 = vpop.permute.xlu1 %1051  ;;  %v1022_v22 = vadd.f32 %v1020_v50, %v972_v8 }
 0x1bc   : > { %v1054_v31 = vpop.permute.xlu0 %1053  ;;  %v1057_v63 = vmax.f32 %v2564_v14, %v1052_v24 }
 0x1bd   : > { %v1058_v16 = vmax.f32 %v2568_v13, %v1054_v31  ;;  %v714_v13 = vstv %s1290_s10 }
 0x1bf   : > { %v694_v29 = vpop.permute.xlu1 %693 }
 0x1c0   : > { %v859_v17 = vpop.permute.xlu0 %858  ;;  %v698_v14 = vmax.f32 %v2572_v15, %v694_v29 }
 0x1c1   : > { %v864_v34 = vmax.f32 %v852_v11, %v859_v17 }
 0x1c3   : > { %v861_v56 = vpop.permute.xlu1 %860  ;;  %v866_v43 = vadd.f32 %v864_v34, %v816_v37 }
 0x1c4   : > { %v865_v18 = vmax.f32 %v853_v61, %v861_v56  ;;  %v897_v49 = vpop.permute.xlu0 %896 }
 0x1c5   : > { %v902_v20 = vmax.f32 %v2576_v52, %v897_v49 }
 0x1c6   : > { %v867_v4 = vadd.f32 %v865_v18, %v817_v38 }
 0x1c7   : > { %v899_v27 = vpop.permute.xlu1 %898 }
 0x1c8   : > { %v1064_v48 = vpop.permute.xlu0 %1063  ;;  %v903_v42 = vmax.f32 %v2580_v12, %v899_v27  ;;  %v3072_v12 = vld [vmem:[#allocation39_spill] sm:$0xff] }
 0x1c9   : > { %v1069_v54 = vmax.f32 %v1057_v63, %v1064_v48 }
 0x1cb   : > { %v1066_v3 = vpop.permute.xlu1 %1065  ;;  %v1071_v62 = vadd.f32 %v1069_v54, %v1021_v32 }
 0x1cc   : > { %v1070_v7 = vmax.f32 %v1058_v16, %v1066_v3  ;;  %v1102_v44 = vpop.permute.xlu0 %1101 }
 0x1cd   : > { %v1107_v46 = vmax.f32 %v2587_v21, %v1102_v44 }
 0x1ce   : > { %v1072_v41 = vadd.f32 %v1070_v7, %v1022_v22 }
 0x1cf   : > { %v1104_v9 = vpop.permute.xlu1 %1103 }
 0x1d0   : > { %v704_v47 = vpop.permute.xlu0 %703  ;;  %v1108_v45 = vmax.f32 %v3072_v12, %v1104_v9 }
 0x1d1   : > { %v709_v25 = vmax.f32 %v697_v53, %v704_v47 }
 0x1d3   : > { %v706_v33 = vpop.permute.xlu1 %705  ;;  %v711_v30 = vadd.f32 %v709_v25, %v2712_v2 }
 0x1d4   : > { %v710_v28 = vmax.f32 %v698_v14, %v706_v33  ;;  %v909_v1 = vpop.permute.xlu0 %908 }
 0x1d5   : > { %v715_v60 = vadd.f32 %v714_v13, %v711_v30  ;;  %v914_v15 = vmax.f32 %v902_v20, %v909_v1 }
 0x1d6   : > { %v712_v0 = vadd.f32 %v710_v28, %v2716_v26 }
 0x1d7   : > { %v911_v23 = vpop.permute.xlu1 %910  ;;  %1291 = vst.msk [vmem:[%s2701_s5 + $0x10] sm:$0xff] %vm512_vm4, %v715_v60  ;;  %v916_v2 = vadd.f32 %v914_v15, %v866_v43 }
 0x1d8   : > { %v716_v52 = vadd.f32 %v714_v13, %v712_v0  ;;  %v915_v37 = vmax.f32 %v903_v42, %v911_v23  ;;  %v1114_v57 = vpop.permute.xlu0 %1113 }
 0x1d9   : > { %v920_v26 = vadd.f32 %v919_v39, %v916_v2  ;;  %v1119_v40 = vmax.f32 %v1107_v46, %v1114_v57 }
 0x1da   : > { %1292 = vst.msk [vmem:[%s2701_s5 + $0x18] sm:$0xff] %vm512_vm4, %v716_v52  ;;  %v917_v38 = vadd.f32 %v915_v37, %v867_v4 }
 0x1db   : > { %v1116_v21 = vpop.permute.xlu1 %1115  ;;  %1306 = vst.msk [vmem:[%s2701_s5 + $0x20] sm:$0xff] %vm512_vm4, %v920_v26  ;;  %v1121_v55 = vadd.f32 %v1119_v40, %v1071_v62 }
 0x1dc   : > { %v921_v58 = vadd.f32 %v919_v39, %v917_v38  ;;  %v1120_v35 = vmax.f32 %v1108_v45, %v1116_v21 }
 0x1dd   : > { %v1125_v36 = vadd.f32 %v1124_v51, %v1121_v55 }
 0x1de   : > { %1307 = vst.msk [vmem:[%s2701_s5 + $0x28] sm:$0xff] %vm512_vm4, %v921_v58  ;;  %v1122_v10 = vadd.f32 %v1120_v35, %v1072_v41 }
 0x1df   : > { %1321 = vst.msk [vmem:[%s2701_s5 + $0x30] sm:$0xff] %vm512_vm4, %v1125_v36 }
 0x1e0   : > { %v1126_v5 = vadd.f32 %v1124_v51, %v1122_v10 }
 0x1e2   : > { %1322 = vst.msk [vmem:[%s2701_s5 + $0x38] sm:$0xff] %vm512_vm4, %v1126_v5 }
 0x1e3   : > { %1492 = shalt.err (!%p1489_p4)
}
 0x1e4   : > { %s1493_s18 = scalar_lea.hbm %s2758_s6, 1024  ;;  %s1497_s17 = scalar_lea.hbm %s3074_s29, 2048 }
 0x1e5   : > { %p1494_p10 = scmp.ne.s32.totalorder %s2758_s6, %s1493_s18  ;;  %p1498_p1 = scmp.lt.s32.totalorder %s2758_s6, %s3074_s29 }
 0x1e6   : > { %p1499_p6 = scmp.lt.s32.totalorder %s1497_s17, %s1493_s18 }
 0x1e7   : > { %p1495_p5 = pnand %p1494_p10, %p3075_p3 }
 0x1e8   : > { %p1500_p11 = por %p1499_p6, %p1498_p1 }
 0x1e9   : > { %p1496_p0 = pneg %p1495_p5 }
 0x1eb   : > { %p1501_p7 = pnand %p1500_p11, %p1496_p0 }
 0x1ed   : > { %1504 = shalt.err (!%p1501_p7)
}
 0x1ee   : > { %s1579_s12 = smov 128   ;;  %s1580_s15 = smov 8  }
 0x1ef   : > { %1340 = dma.vmem_to_hbm [thread:$0]  (%p3075_p3), %s2760_s28, 1024, %s2758_s6, %s1131_s30, %s1579_s12, %s1579_s12, %s1580_s15  }
 0x1f0 PF: > { %s3076_s25 = sld [smem:[#allocation15_spill]] }
 0x1f1   : > { %s3077_s19 = sld [smem:[#allocation22_spill]] }
 0x1f2   : > { %s3078_s1 = sld [smem:[#allocation20_spill]] }
 0x1f6   : > { %s1162_s4 = sand.u32 1, %s3076_s25  }
 0x1f7   : > { %p3079_p8 = scmp.ne.s32.totalorder %s3077_s19, 0  ;;  %s1163_s8 = scalar_lea.sflag [#allocation5], %s1162_s4 }
 0x1f8   : > { %p3080_p9 = scmp.ge.s32.totalorder %s3078_s1, 2 }
 0x1fa   : > { %p1354_p12 = pnand %p3080_p9, %p3079_p8 }
 0x1fc   : > { %p1355_p13 = pneg %p1354_p12 }
 0x1fe   : > { %1542 = dma.done.wait (%p1355_p13), %s1163_s8, 1024  }
 0x1ff   : > { %1544 = vsyncadd (%p1355_p13), %s1163_s8, 4294966272  ;;  %s21_s17 = sadd.s32 1, %s3078_s1   ;;  %s3081_s12 = sld [smem:[#allocation16_spill]] }
 0x200   : > { %p18_p2 = scmp.ge.s32.totalorder %s21_s17, 4   ;;  %s3082_s13 = sld [smem:[#allocation17_spill]] }
 0x201   : > { %s3083_s14 = sld [smem:[#allocation24_spill]] }
 0x202   : > { %s3084_s15 = sld [smem:[#allocation19_spill]]  ;;  %20 = sbr.rel (!%p18_p2) target bundleno = 13 (0xd), region = 92 }
 0x203   : > { %s3085_s16 = sld [smem:[#allocation23_spill]] }
 0x207   :  { %1168 = vsyncpa [#allocation4], 1 }
 0x208   :  { %1170 = vsyncpa [#allocation4 + $0x1], 1 }
 0x209   :  { %1171 = vsyncpa [#allocation5], 1 }
 0x20a   :  { %1173 = vsyncpa [#allocation5 + $0x1], 1 }
 0x20b   :  { %1174 = vsyncpa [#allocation6], 1 }
 0x20c   :  { %1176 = vsyncpa [#allocation6 + $0x1], 1 }
 0x20d   :  { %1177 = vsyncpa [#allocation9], 1 }

</bundles_post_ra>
